<compile_context>
chip_gen: v6e
topology: v6e:2x2x1
jax: 0.10.0
libtpu: 0.0.40
codegen_flags: <defaults>
</compile_context>

<pallas_src>
import functools

import jax
import jax.numpy as jnp
import numpy as np
from jax import lax
from jax.experimental import pallas as pl
from jax.experimental.pallas import tpu as pltpu


# -----------------------------------------------------------------------------
# Pallas kernel: one invocation runs the whole sequence (both layers + fc head)
# -----------------------------------------------------------------------------
def lstm_kernel(x_ref, wih0_ref, whh0_ref, b0_ref,
                w1_ref, b1_ref, wfc_ref, bfc_ref,
                out_ref,
                *, hidden_size, seq_len, input_size):
    H = hidden_size
    T = seq_len
    B = x_ref.shape[1]

    # ---- Phase 1: layer-0 input projection hoisted out of the recurrence ----
    # gates_x[t] = x[t] @ W_ih0 + (b_ih0 + b_hh0), computed for ALL timesteps.
    if input_size == 1:
        # K == 1 contraction is an outer product: VPU broadcast-mul, no MXU.
        # (T, B, 1) * (1, 4H) -> (T, B, 4H)
        xg = x_ref[...].astype(jnp.float32) * wih0_ref[...] + b0_ref[...]
    else:
        xf = x_ref[...].reshape(T * B, input_size)
        xg = (jnp.dot(xf, wih0_ref[...], preferred_element_type=jnp.float32)
              + b0_ref[...]).reshape(T, B, 4 * H)
    # xg stays as a traced value (vregs) — no VMEM scratch round-trip.

    # Weights loaded into vregs/VMEM exactly once for the whole recurrence.
    whh0 = whh0_ref[...]     # (H, 4H)  bf16
    w1 = w1_ref[...]         # (2H, 4H) bf16 = vstack([W_ih1, W_hh1])
    b1 = b1_ref[...]         # (1, 4H)  f32

    # Static lane mask selecting the candidate-gate block [2H, 3H); hoisted
    # out of the loop (JAX does not CSE broadcast_in_dim).
    lane = lax.broadcasted_iota(jnp.int32, (B, 4 * H), 1)
    g_mask = (lane >= 2 * H) & (lane < 3 * H)

    def gate_act(gates, c):
        # Full-width EUP: one sigmoid + one tanh over the whole (B, 4H) vreg,
        # then a VPU select.  Per-gate lane slices only feed VPU mul/add.
        # PyTorch gate order along lanes: [i, f, g, o].
        sg = jax.nn.sigmoid(gates)
        tg = jnp.tanh(gates)
        act = jnp.where(g_mask, tg, sg)
        i = act[:, 0:H]
        f = act[:, H:2 * H]
        g = act[:, 2 * H:3 * H]
        o = act[:, 3 * H:4 * H]
        c_new = f * c + i * g
        h_new = o * jnp.tanh(c_new)
        return h_new, c_new

    z = jnp.zeros((B, H), jnp.float32)
    h0, c0, h1, c1 = z, z, z, z

    # Trace-time unrolled recurrence (T small and static here).
    for t in range(T):
        # Layer 0: input projection + bias already precomputed, so only
        # h0 @ W_hh0 remains on the serial critical path.
        g0 = xg[t] + jnp.dot(h0.astype(whh0.dtype), whh0,
                             preferred_element_type=jnp.float32)
        h0, c0 = gate_act(g0, c0)
        # Layer 1: both projections fused into one (B, 2H) @ (2H, 4H) MXU dot.
        a_cat = jnp.concatenate([h0, h1], axis=1).astype(w1.dtype)
        g1 = jnp.dot(a_cat, w1, preferred_element_type=jnp.float32) + b1
        h1, c1 = gate_act(g1, c1)

    # ---- fc head: N == 1 matmul -> VPU broadcast-mul + lane reduction (XLU) -
    # out = h_last @ W_fc^T + b_fc, with W_fc kept in its (1, H) PyTorch layout.
    out_ref[...] = (jnp.sum(h1 * wfc_ref[...], axis=-1, keepdims=True)
                    + bfc_ref[...])


# -----------------------------------------------------------------------------
# Wrapper
# -----------------------------------------------------------------------------
def lstm_model_forward(x, params):
    B, T, I = x.shape
    H = params["whh0"].shape[0]
    x_tm = jnp.transpose(x, (1, 0, 2))   # (T, B, I) time-major

    kernel = functools.partial(lstm_kernel, hidden_size=H, seq_len=T,
                               input_size=I)
    vmem = pl.BlockSpec(memory_space=pltpu.MemorySpace.VMEM)

    return pl.pallas_call(
        kernel,
        out_shape=jax.ShapeDtypeStruct((B, 1), jnp.float32),
        in_specs=[vmem] * 8,            # whole (tiny) arrays resident in VMEM
        out_specs=vmem,
    )(x_tm,
      params["wih0"], params["whh0"], params["b0"],
      params["w1"], params["b1"],
      params["wfc"], params["bfc"])


# -----------------------------------------------------------------------------
# Deterministic parameter init (nn.LSTM / nn.Linear shapes, kernel layout)
# -----------------------------------------------------------------------------
def init_params(key, input_size, hidden_size, recurrent_dtype=jnp.bfloat16):
    H = hidden_size
    k = 1.0 / np.sqrt(H)
    keys = jax.random.split(key, 10)

    def u(kk, shape):
        return jax.random.uniform(kk, shape, jnp.float32, -k, k)

    # PyTorch: weight_ih_l0 (4H, I), weight_hh_l0 (4H, H), biases (4H,)
    w_ih0 = u(keys[0], (4 * H, input_size))
    w_hh0 = u(keys[1], (4 * H, H))
    b_ih0 = u(keys[2], (4 * H,))
    b_hh0 = u(keys[3], (4 * H,))
    # layer 1 input is hidden_size
    w_ih1 = u(keys[4], (4 * H, H))
    w_hh1 = u(keys[5], (4 * H, H))
    b_ih1 = u(keys[6], (4 * H,))
    b_hh1 = u(keys[7], (4 * H,))
    # fc: weight (1, H), bias (1,)
    w_fc = u(keys[8], (1, H))
    b_fc = u(keys[9], (1,))

    return {
        # layer-0 input projection: K == I == 1 -> f32 VPU outer-product path.
        "wih0": w_ih0.T,                                                # (I, 4H)
        # recurrent / MXU weights in bf16 (native MXU dtype), f32 accumulate.
        "whh0": w_hh0.T.astype(recurrent_dtype),                        # (H, 4H)
        "w1": jnp.vstack([w_ih1.T, w_hh1.T]).astype(recurrent_dtype),   # (2H, 4H)
        # biases pre-summed (b_ih + b_hh), kept f32.
        "b0": (b_ih0 + b_hh0)[None, :],                                 # (1, 4H)
        "b1": (b_ih1 + b_hh1)[None, :],                                 # (1, 4H)
        # fc head stays f32 (VPU broadcast + lane reduce).
        "wfc": w_fc,                                                    # (1, H)
        "bfc": b_fc[None, :],                                           # (1, 1)
    }


# -----------------------------------------------------------------------------
# Pure-JAX reference (same math & same bf16 recurrent weights, lax.scan)
# -----------------------------------------------------------------------------
def reference_forward(x, params):
    B, T, I = x.shape
    H = params["whh0"].shape[0]
    whh0 = params["whh0"]
    w1 = params["w1"]

    def cell(gates, c):
        i = jax.nn.sigmoid(gates[:, 0:H])
        f = jax.nn.sigmoid(gates[:, H:2 * H])
        g = jnp.tanh(gates[:, 2 * H:3 * H])
        o = jax.nn.sigmoid(gates[:, 3 * H:4 * H])
        c_new = f * c + i * g
        return o * jnp.tanh(c_new), c_new

    def step(carry, x_t):
        h0, c0, h1, c1 = carry
        g0 = (x_t @ params["wih0"] + params["b0"]
              + jnp.dot(h0.astype(whh0.dtype), whh0,
                        preferred_element_type=jnp.float32))
        h0, c0 = cell(g0, c0)
        a_cat = jnp.concatenate([h0, h1], axis=1).astype(w1.dtype)
        g1 = (jnp.dot(a_cat, w1, preferred_element_type=jnp.float32)
              + params["b1"])
        h1, c1 = cell(g1, c1)
        return (h0, c0, h1, c1), h1

    z = jnp.zeros((B, H), jnp.float32)
    (_, _, h1, _), _ = lax.scan(step, (z, z, z, z),
                                jnp.transpose(x, (1, 0, 2)))
    return jnp.sum(h1 * params["wfc"], axis=-1, keepdims=True) + params["bfc"]


if __name__ == "__main__":
    B, T, I, H = 2, 8, 1, 32  # small shapes consistent with the module

    key = jax.random.PRNGKey(0)
    k_x, k_p = jax.random.split(key)
    x = jax.random.normal(k_x, (B, T, I), jnp.float32)
    params = init_params(k_p, I, H)

    out = jax.block_until_ready(lstm_model_forward(x, params))

    ref = jax.block_until_ready(reference_forward(x, params))
    np.testing.assert_allclose(np.asarray(out), np.asarray(ref),
                               rtol=1e-3, atol=1e-3)
    assert out.shape == (B, 1)
    print("KERNEL_OK")
</pallas_src>

<mosaic_0001>
module attributes {stable_mosaic.version = 11 : i64} {
  func.func @lstm_kernel(%arg0: memref<8x2x1xf32, #tpu.memory_space<vmem>>, %arg1: memref<1x128xf32, #tpu.memory_space<vmem>>, %arg2: memref<32x128xbf16, #tpu.memory_space<vmem>>, %arg3: memref<1x128xf32, #tpu.memory_space<vmem>>, %arg4: memref<64x128xbf16, #tpu.memory_space<vmem>>, %arg5: memref<1x128xf32, #tpu.memory_space<vmem>>, %arg6: memref<1x32xf32, #tpu.memory_space<vmem>>, %arg7: memref<1x1xf32, #tpu.memory_space<vmem>>, %arg8: memref<2x1xf32, #tpu.memory_space<vmem>>) attributes {dimension_semantics = [], scalar_prefetch = 0 : i64, scratch_operands = 0 : i64, tpu.core_type = #tpu.core_type<tc>} {
    %c0 = arith.constant 0 : index
    %c0_0 = arith.constant 0 : index
    %c0_1 = arith.constant 0 : index
    %0 = vector.load %arg0[%c0, %c0_0, %c0_1] : memref<8x2x1xf32, #tpu.memory_space<vmem>>, vector<8x2x1xf32>
    %c0_2 = arith.constant 0 : index
    %c0_3 = arith.constant 0 : index
    %1 = vector.load %arg1[%c0_2, %c0_3] : memref<1x128xf32, #tpu.memory_space<vmem>>, vector<1x128xf32>
    %2 = vector.shape_cast %1 : vector<1x128xf32> to vector<1x1x128xf32>
    %3 = vector.broadcast %0 : vector<8x2x1xf32> to vector<8x2x128xf32>
    %4 = vector.broadcast %2 : vector<1x1x128xf32> to vector<8x2x128xf32>
    %5 = arith.mulf %3, %4 : vector<8x2x128xf32>
    %c0_4 = arith.constant 0 : index
    %c0_5 = arith.constant 0 : index
    %6 = vector.load %arg3[%c0_4, %c0_5] : memref<1x128xf32, #tpu.memory_space<vmem>>, vector<1x128xf32>
    %7 = vector.shape_cast %6 : vector<1x128xf32> to vector<1x1x128xf32>
    %8 = vector.broadcast %7 : vector<1x1x128xf32> to vector<8x2x128xf32>
    %9 = arith.addf %5, %8 : vector<8x2x128xf32>
    %c0_6 = arith.constant 0 : index
    %c0_7 = arith.constant 0 : index
    %10 = vector.load %arg2[%c0_6, %c0_7] : memref<32x128xbf16, #tpu.memory_space<vmem>>, vector<32x128xbf16>
    %c0_8 = arith.constant 0 : index
    %c0_9 = arith.constant 0 : index
    %11 = vector.load %arg4[%c0_8, %c0_9] : memref<64x128xbf16, #tpu.memory_space<vmem>>, vector<64x128xbf16>
    %c0_10 = arith.constant 0 : index
    %c0_11 = arith.constant 0 : index
    %12 = vector.load %arg5[%c0_10, %c0_11] : memref<1x128xf32, #tpu.memory_space<vmem>>, vector<1x128xf32>
    %13 = tpu.iota {dimensions = array<i32: 1>} : vector<2x128xi32>
    %c64_i32 = arith.constant 64 : i32
    %14 = vector.broadcast %c64_i32 : i32 to vector<2x128xi32>
    %15 = arith.cmpi sge, %13, %14 : vector<2x128xi32>
    %c96_i32 = arith.constant 96 : i32
    %16 = vector.broadcast %c96_i32 : i32 to vector<2x128xi32>
    %17 = arith.cmpi slt, %13, %16 : vector<2x128xi32>
    %18 = arith.andi %15, %17 : vector<2x128xi1>
    %cst = arith.constant 0.000000e+00 : f32
    %19 = vector.broadcast %cst : f32 to vector<2x32xf32>
    %20 = vector.extract_strided_slice %9 {offsets = [0, 0, 0], sizes = [1, 2, 128], strides = [1, 1, 1]} : vector<8x2x128xf32> to vector<1x2x128xf32>
    %21 = vector.shape_cast %20 : vector<1x2x128xf32> to vector<2x128xf32>
    %22 = arith.truncf %19 : vector<2x32xf32> to vector<2x32xbf16>
    %cst_12 = arith.constant dense<0.000000e+00> : vector<2x128xf32>
    %23 = tpu.matmul %22, %10, %cst_12 {dimension_numbers = #tpu.dot_dimension_numbers<[1], [0], [0], [1], [0, 0, 1, 1], [], []>} : vector<2x32xbf16>, vector<32x128xbf16>, vector<2x128xf32> -> vector<2x128xf32>
    %24 = arith.addf %21, %23 : vector<2x128xf32>
    %25 = arith.negf %24 : vector<2x128xf32>
    %26 = math.exp %25 : vector<2x128xf32>
    %cst_13 = arith.constant 1.000000e+00 : f32
    %27 = vector.broadcast %cst_13 : f32 to vector<2x128xf32>
    %28 = arith.addf %27, %26 : vector<2x128xf32>
    %29 = arith.divf %27, %28 : vector<2x128xf32>
    %30 = math.tanh %24 : vector<2x128xf32>
    %31 = arith.select %18, %30, %29 : vector<2x128xi1>, vector<2x128xf32>
    %32 = vector.extract_strided_slice %31 {offsets = [0, 0], sizes = [2, 32], strides = [1, 1]} : vector<2x128xf32> to vector<2x32xf32>
    %33 = vector.extract_strided_slice %31 {offsets = [0, 32], sizes = [2, 32], strides = [1, 1]} : vector<2x128xf32> to vector<2x32xf32>
    %34 = vector.extract_strided_slice %31 {offsets = [0, 64], sizes = [2, 32], strides = [1, 1]} : vector<2x128xf32> to vector<2x32xf32>
    %35 = vector.extract_strided_slice %31 {offsets = [0, 96], sizes = [2, 32], strides = [1, 1]} : vector<2x128xf32> to vector<2x32xf32>
    %36 = arith.mulf %33, %19 : vector<2x32xf32>
    %37 = arith.mulf %32, %34 : vector<2x32xf32>
    %38 = arith.addf %36, %37 : vector<2x32xf32>
    %39 = math.tanh %38 : vector<2x32xf32>
    %40 = arith.mulf %35, %39 : vector<2x32xf32>
    %41 = tpu.concatenate %40, %19 in 1 : vector<2x32xf32>, vector<2x32xf32> -> vector<2x64xf32>
    %42 = arith.truncf %41 : vector<2x64xf32> to vector<2x64xbf16>
    %cst_14 = arith.constant dense<0.000000e+00> : vector<2x128xf32>
    %43 = tpu.matmul %42, %11, %cst_14 {dimension_numbers = #tpu.dot_dimension_numbers<[1], [0], [0], [1], [0, 0, 1, 1], [], []>} : vector<2x64xbf16>, vector<64x128xbf16>, vector<2x128xf32> -> vector<2x128xf32>
    %44 = vector.broadcast %12 : vector<1x128xf32> to vector<2x128xf32>
    %45 = arith.addf %43, %44 : vector<2x128xf32>
    %46 = arith.negf %45 : vector<2x128xf32>
    %47 = math.exp %46 : vector<2x128xf32>
    %cst_15 = arith.constant 1.000000e+00 : f32
    %48 = vector.broadcast %cst_15 : f32 to vector<2x128xf32>
    %49 = arith.addf %48, %47 : vector<2x128xf32>
    %50 = arith.divf %48, %49 : vector<2x128xf32>
    %51 = math.tanh %45 : vector<2x128xf32>
    %52 = arith.select %18, %51, %50 : vector<2x128xi1>, vector<2x128xf32>
    %53 = vector.extract_strided_slice %52 {offsets = [0, 0], sizes = [2, 32], strides = [1, 1]} : vector<2x128xf32> to vector<2x32xf32>
    %54 = vector.extract_strided_slice %52 {offsets = [0, 32], sizes = [2, 32], strides = [1, 1]} : vector<2x128xf32> to vector<2x32xf32>
    %55 = vector.extract_strided_slice %52 {offsets = [0, 64], sizes = [2, 32], strides = [1, 1]} : vector<2x128xf32> to vector<2x32xf32>
    %56 = vector.extract_strided_slice %52 {offsets = [0, 96], sizes = [2, 32], strides = [1, 1]} : vector<2x128xf32> to vector<2x32xf32>
    %57 = arith.mulf %54, %19 : vector<2x32xf32>
    %58 = arith.mulf %53, %55 : vector<2x32xf32>
    %59 = arith.addf %57, %58 : vector<2x32xf32>
    %60 = math.tanh %59 : vector<2x32xf32>
    %61 = arith.mulf %56, %60 : vector<2x32xf32>
    %62 = vector.extract_strided_slice %9 {offsets = [1, 0, 0], sizes = [1, 2, 128], strides = [1, 1, 1]} : vector<8x2x128xf32> to vector<1x2x128xf32>
    %63 = vector.shape_cast %62 : vector<1x2x128xf32> to vector<2x128xf32>
    %64 = arith.truncf %40 : vector<2x32xf32> to vector<2x32xbf16>
    %cst_16 = arith.constant dense<0.000000e+00> : vector<2x128xf32>
    %65 = tpu.matmul %64, %10, %cst_16 {dimension_numbers = #tpu.dot_dimension_numbers<[1], [0], [0], [1], [0, 0, 1, 1], [], []>} : vector<2x32xbf16>, vector<32x128xbf16>, vector<2x128xf32> -> vector<2x128xf32>
    %66 = arith.addf %63, %65 : vector<2x128xf32>
    %67 = arith.negf %66 : vector<2x128xf32>
    %68 = math.exp %67 : vector<2x128xf32>
    %cst_17 = arith.constant 1.000000e+00 : f32
    %69 = vector.broadcast %cst_17 : f32 to vector<2x128xf32>
    %70 = arith.addf %69, %68 : vector<2x128xf32>
    %71 = arith.divf %69, %70 : vector<2x128xf32>
    %72 = math.tanh %66 : vector<2x128xf32>
    %73 = arith.select %18, %72, %71 : vector<2x128xi1>, vector<2x128xf32>
    %74 = vector.extract_strided_slice %73 {offsets = [0, 0], sizes = [2, 32], strides = [1, 1]} : vector<2x128xf32> to vector<2x32xf32>
    %75 = vector.extract_strided_slice %73 {offsets = [0, 32], sizes = [2, 32], strides = [1, 1]} : vector<2x128xf32> to vector<2x32xf32>
    %76 = vector.extract_strided_slice %73 {offsets = [0, 64], sizes = [2, 32], strides = [1, 1]} : vector<2x128xf32> to vector<2x32xf32>
    %77 = vector.extract_strided_slice %73 {offsets = [0, 96], sizes = [2, 32], strides = [1, 1]} : vector<2x128xf32> to vector<2x32xf32>
    %78 = arith.mulf %75, %38 : vector<2x32xf32>
    %79 = arith.mulf %74, %76 : vector<2x32xf32>
    %80 = arith.addf %78, %79 : vector<2x32xf32>
    %81 = math.tanh %80 : vector<2x32xf32>
    %82 = arith.mulf %77, %81 : vector<2x32xf32>
    %83 = tpu.concatenate %82, %61 in 1 : vector<2x32xf32>, vector<2x32xf32> -> vector<2x64xf32>
    %84 = arith.truncf %83 : vector<2x64xf32> to vector<2x64xbf16>
    %cst_18 = arith.constant dense<0.000000e+00> : vector<2x128xf32>
    %85 = tpu.matmul %84, %11, %cst_18 {dimension_numbers = #tpu.dot_dimension_numbers<[1], [0], [0], [1], [0, 0, 1, 1], [], []>} : vector<2x64xbf16>, vector<64x128xbf16>, vector<2x128xf32> -> vector<2x128xf32>
    %86 = vector.broadcast %12 : vector<1x128xf32> to vector<2x128xf32>
    %87 = arith.addf %85, %86 : vector<2x128xf32>
    %88 = arith.negf %87 : vector<2x128xf32>
    %89 = math.exp %88 : vector<2x128xf32>
    %cst_19 = arith.constant 1.000000e+00 : f32
    %90 = vector.broadcast %cst_19 : f32 to vector<2x128xf32>
    %91 = arith.addf %90, %89 : vector<2x128xf32>
    %92 = arith.divf %90, %91 : vector<2x128xf32>
    %93 = math.tanh %87 : vector<2x128xf32>
    %94 = arith.select %18, %93, %92 : vector<2x128xi1>, vector<2x128xf32>
    %95 = vector.extract_strided_slice %94 {offsets = [0, 0], sizes = [2, 32], strides = [1, 1]} : vector<2x128xf32> to vector<2x32xf32>
    %96 = vector.extract_strided_slice %94 {offsets = [0, 32], sizes = [2, 32], strides = [1, 1]} : vector<2x128xf32> to vector<2x32xf32>
    %97 = vector.extract_strided_slice %94 {offsets = [0, 64], sizes = [2, 32], strides = [1, 1]} : vector<2x128xf32> to vector<2x32xf32>
    %98 = vector.extract_strided_slice %94 {offsets = [0, 96], sizes = [2, 32], strides = [1, 1]} : vector<2x128xf32> to vector<2x32xf32>
    %99 = arith.mulf %96, %59 : vector<2x32xf32>
    %100 = arith.mulf %95, %97 : vector<2x32xf32>
    %101 = arith.addf %99, %100 : vector<2x32xf32>
    %102 = math.tanh %101 : vector<2x32xf32>
    %103 = arith.mulf %98, %102 : vector<2x32xf32>
    %104 = vector.extract_strided_slice %9 {offsets = [2, 0, 0], sizes = [1, 2, 128], strides = [1, 1, 1]} : vector<8x2x128xf32> to vector<1x2x128xf32>
    %105 = vector.shape_cast %104 : vector<1x2x128xf32> to vector<2x128xf32>
    %106 = arith.truncf %82 : vector<2x32xf32> to vector<2x32xbf16>
    %cst_20 = arith.constant dense<0.000000e+00> : vector<2x128xf32>
    %107 = tpu.matmul %106, %10, %cst_20 {dimension_numbers = #tpu.dot_dimension_numbers<[1], [0], [0], [1], [0, 0, 1, 1], [], []>} : vector<2x32xbf16>, vector<32x128xbf16>, vector<2x128xf32> -> vector<2x128xf32>
    %108 = arith.addf %105, %107 : vector<2x128xf32>
    %109 = arith.negf %108 : vector<2x128xf32>
    %110 = math.exp %109 : vector<2x128xf32>
    %cst_21 = arith.constant 1.000000e+00 : f32
    %111 = vector.broadcast %cst_21 : f32 to vector<2x128xf32>
    %112 = arith.addf %111, %110 : vector<2x128xf32>
    %113 = arith.divf %111, %112 : vector<2x128xf32>
    %114 = math.tanh %108 : vector<2x128xf32>
    %115 = arith.select %18, %114, %113 : vector<2x128xi1>, vector<2x128xf32>
    %116 = vector.extract_strided_slice %115 {offsets = [0, 0], sizes = [2, 32], strides = [1, 1]} : vector<2x128xf32> to vector<2x32xf32>
    %117 = vector.extract_strided_slice %115 {offsets = [0, 32], sizes = [2, 32], strides = [1, 1]} : vector<2x128xf32> to vector<2x32xf32>
    %118 = vector.extract_strided_slice %115 {offsets = [0, 64], sizes = [2, 32], strides = [1, 1]} : vector<2x128xf32> to vector<2x32xf32>
    %119 = vector.extract_strided_slice %115 {offsets = [0, 96], sizes = [2, 32], strides = [1, 1]} : vector<2x128xf32> to vector<2x32xf32>
    %120 = arith.mulf %117, %80 : vector<2x32xf32>
    %121 = arith.mulf %116, %118 : vector<2x32xf32>
    %122 = arith.addf %120, %121 : vector<2x32xf32>
    %123 = math.tanh %122 : vector<2x32xf32>
    %124 = arith.mulf %119, %123 : vector<2x32xf32>
    %125 = tpu.concatenate %124, %103 in 1 : vector<2x32xf32>, vector<2x32xf32> -> vector<2x64xf32>
    %126 = arith.truncf %125 : vector<2x64xf32> to vector<2x64xbf16>
    %cst_22 = arith.constant dense<0.000000e+00> : vector<2x128xf32>
    %127 = tpu.matmul %126, %11, %cst_22 {dimension_numbers = #tpu.dot_dimension_numbers<[1], [0], [0], [1], [0, 0, 1, 1], [], []>} : vector<2x64xbf16>, vector<64x128xbf16>, vector<2x128xf32> -> vector<2x128xf32>
    %128 = vector.broadcast %12 : vector<1x128xf32> to vector<2x128xf32>
    %129 = arith.addf %127, %128 : vector<2x128xf32>
    %130 = arith.negf %129 : vector<2x128xf32>
    %131 = math.exp %130 : vector<2x128xf32>
    %cst_23 = arith.constant 1.000000e+00 : f32
    %132 = vector.broadcast %cst_23 : f32 to vector<2x128xf32>
    %133 = arith.addf %132, %131 : vector<2x128xf32>
    %134 = arith.divf %132, %133 : vector<2x128xf32>
    %135 = math.tanh %129 : vector<2x128xf32>
    %136 = arith.select %18, %135, %134 : vector<2x128xi1>, vector<2x128xf32>
    %137 = vector.extract_strided_slice %136 {offsets = [0, 0], sizes = [2, 32], strides = [1, 1]} : vector<2x128xf32> to vector<2x32xf32>
    %138 = vector.extract_strided_slice %136 {offsets = [0, 32], sizes = [2, 32], strides = [1, 1]} : vector<2x128xf32> to vector<2x32xf32>
    %139 = vector.extract_strided_slice %136 {offsets = [0, 64], sizes = [2, 32], strides = [1, 1]} : vector<2x128xf32> to vector<2x32xf32>
    %140 = vector.extract_strided_slice %136 {offsets = [0, 96], sizes = [2, 32], strides = [1, 1]} : vector<2x128xf32> to vector<2x32xf32>
    %141 = arith.mulf %138, %101 : vector<2x32xf32>
    %142 = arith.mulf %137, %139 : vector<2x32xf32>
    %143 = arith.addf %141, %142 : vector<2x32xf32>
    %144 = math.tanh %143 : vector<2x32xf32>
    %145 = arith.mulf %140, %144 : vector<2x32xf32>
    %146 = vector.extract_strided_slice %9 {offsets = [3, 0, 0], sizes = [1, 2, 128], strides = [1, 1, 1]} : vector<8x2x128xf32> to vector<1x2x128xf32>
    %147 = vector.shape_cast %146 : vector<1x2x128xf32> to vector<2x128xf32>
    %148 = arith.truncf %124 : vector<2x32xf32> to vector<2x32xbf16>
    %cst_24 = arith.constant dense<0.000000e+00> : vector<2x128xf32>
    %149 = tpu.matmul %148, %10, %cst_24 {dimension_numbers = #tpu.dot_dimension_numbers<[1], [0], [0], [1], [0, 0, 1, 1], [], []>} : vector<2x32xbf16>, vector<32x128xbf16>, vector<2x128xf32> -> vector<2x128xf32>
    %150 = arith.addf %147, %149 : vector<2x128xf32>
    %151 = arith.negf %150 : vector<2x128xf32>
    %152 = math.exp %151 : vector<2x128xf32>
    %cst_25 = arith.constant 1.000000e+00 : f32
    %153 = vector.broadcast %cst_25 : f32 to vector<2x128xf32>
    %154 = arith.addf %153, %152 : vector<2x128xf32>
    %155 = arith.divf %153, %154 : vector<2x128xf32>
    %156 = math.tanh %150 : vector<2x128xf32>
    %157 = arith.select %18, %156, %155 : vector<2x128xi1>, vector<2x128xf32>
    %158 = vector.extract_strided_slice %157 {offsets = [0, 0], sizes = [2, 32], strides = [1, 1]} : vector<2x128xf32> to vector<2x32xf32>
    %159 = vector.extract_strided_slice %157 {offsets = [0, 32], sizes = [2, 32], strides = [1, 1]} : vector<2x128xf32> to vector<2x32xf32>
    %160 = vector.extract_strided_slice %157 {offsets = [0, 64], sizes = [2, 32], strides = [1, 1]} : vector<2x128xf32> to vector<2x32xf32>
    %161 = vector.extract_strided_slice %157 {offsets = [0, 96], sizes = [2, 32], strides = [1, 1]} : vector<2x128xf32> to vector<2x32xf32>
    %162 = arith.mulf %159, %122 : vector<2x32xf32>
    %163 = arith.mulf %158, %160 : vector<2x32xf32>
    %164 = arith.addf %162, %163 : vector<2x32xf32>
    %165 = math.tanh %164 : vector<2x32xf32>
    %166 = arith.mulf %161, %165 : vector<2x32xf32>
    %167 = tpu.concatenate %166, %145 in 1 : vector<2x32xf32>, vector<2x32xf32> -> vector<2x64xf32>
    %168 = arith.truncf %167 : vector<2x64xf32> to vector<2x64xbf16>
    %cst_26 = arith.constant dense<0.000000e+00> : vector<2x128xf32>
    %169 = tpu.matmul %168, %11, %cst_26 {dimension_numbers = #tpu.dot_dimension_numbers<[1], [0], [0], [1], [0, 0, 1, 1], [], []>} : vector<2x64xbf16>, vector<64x128xbf16>, vector<2x128xf32> -> vector<2x128xf32>
    %170 = vector.broadcast %12 : vector<1x128xf32> to vector<2x128xf32>
    %171 = arith.addf %169, %170 : vector<2x128xf32>
    %172 = arith.negf %171 : vector<2x128xf32>
    %173 = math.exp %172 : vector<2x128xf32>
    %cst_27 = arith.constant 1.000000e+00 : f32
    %174 = vector.broadcast %cst_27 : f32 to vector<2x128xf32>
    %175 = arith.addf %174, %173 : vector<2x128xf32>
    %176 = arith.divf %174, %175 : vector<2x128xf32>
    %177 = math.tanh %171 : vector<2x128xf32>
    %178 = arith.select %18, %177, %176 : vector<2x128xi1>, vector<2x128xf32>
    %179 = vector.extract_strided_slice %178 {offsets = [0, 0], sizes = [2, 32], strides = [1, 1]} : vector<2x128xf32> to vector<2x32xf32>
    %180 = vector.extract_strided_slice %178 {offsets = [0, 32], sizes = [2, 32], strides = [1, 1]} : vector<2x128xf32> to vector<2x32xf32>
    %181 = vector.extract_strided_slice %178 {offsets = [0, 64], sizes = [2, 32], strides = [1, 1]} : vector<2x128xf32> to vector<2x32xf32>
    %182 = vector.extract_strided_slice %178 {offsets = [0, 96], sizes = [2, 32], strides = [1, 1]} : vector<2x128xf32> to vector<2x32xf32>
    %183 = arith.mulf %180, %143 : vector<2x32xf32>
    %184 = arith.mulf %179, %181 : vector<2x32xf32>
    %185 = arith.addf %183, %184 : vector<2x32xf32>
    %186 = math.tanh %185 : vector<2x32xf32>
    %187 = arith.mulf %182, %186 : vector<2x32xf32>
    %188 = vector.extract_strided_slice %9 {offsets = [4, 0, 0], sizes = [1, 2, 128], strides = [1, 1, 1]} : vector<8x2x128xf32> to vector<1x2x128xf32>
    %189 = vector.shape_cast %188 : vector<1x2x128xf32> to vector<2x128xf32>
    %190 = arith.truncf %166 : vector<2x32xf32> to vector<2x32xbf16>
    %cst_28 = arith.constant dense<0.000000e+00> : vector<2x128xf32>
    %191 = tpu.matmul %190, %10, %cst_28 {dimension_numbers = #tpu.dot_dimension_numbers<[1], [0], [0], [1], [0, 0, 1, 1], [], []>} : vector<2x32xbf16>, vector<32x128xbf16>, vector<2x128xf32> -> vector<2x128xf32>
    %192 = arith.addf %189, %191 : vector<2x128xf32>
    %193 = arith.negf %192 : vector<2x128xf32>
    %194 = math.exp %193 : vector<2x128xf32>
    %cst_29 = arith.constant 1.000000e+00 : f32
    %195 = vector.broadcast %cst_29 : f32 to vector<2x128xf32>
    %196 = arith.addf %195, %194 : vector<2x128xf32>
    %197 = arith.divf %195, %196 : vector<2x128xf32>
    %198 = math.tanh %192 : vector<2x128xf32>
    %199 = arith.select %18, %198, %197 : vector<2x128xi1>, vector<2x128xf32>
    %200 = vector.extract_strided_slice %199 {offsets = [0, 0], sizes = [2, 32], strides = [1, 1]} : vector<2x128xf32> to vector<2x32xf32>
    %201 = vector.extract_strided_slice %199 {offsets = [0, 32], sizes = [2, 32], strides = [1, 1]} : vector<2x128xf32> to vector<2x32xf32>
    %202 = vector.extract_strided_slice %199 {offsets = [0, 64], sizes = [2, 32], strides = [1, 1]} : vector<2x128xf32> to vector<2x32xf32>
    %203 = vector.extract_strided_slice %199 {offsets = [0, 96], sizes = [2, 32], strides = [1, 1]} : vector<2x128xf32> to vector<2x32xf32>
    %204 = arith.mulf %201, %164 : vector<2x32xf32>
    %205 = arith.mulf %200, %202 : vector<2x32xf32>
    %206 = arith.addf %204, %205 : vector<2x32xf32>
    %207 = math.tanh %206 : vector<2x32xf32>
    %208 = arith.mulf %203, %207 : vector<2x32xf32>
    %209 = tpu.concatenate %208, %187 in 1 : vector<2x32xf32>, vector<2x32xf32> -> vector<2x64xf32>
    %210 = arith.truncf %209 : vector<2x64xf32> to vector<2x64xbf16>
    %cst_30 = arith.constant dense<0.000000e+00> : vector<2x128xf32>
    %211 = tpu.matmul %210, %11, %cst_30 {dimension_numbers = #tpu.dot_dimension_numbers<[1], [0], [0], [1], [0, 0, 1, 1], [], []>} : vector<2x64xbf16>, vector<64x128xbf16>, vector<2x128xf32> -> vector<2x128xf32>
    %212 = vector.broadcast %12 : vector<1x128xf32> to vector<2x128xf32>
    %213 = arith.addf %211, %212 : vector<2x128xf32>
    %214 = arith.negf %213 : vector<2x128xf32>
    %215 = math.exp %214 : vector<2x128xf32>
    %cst_31 = arith.constant 1.000000e+00 : f32
    %216 = vector.broadcast %cst_31 : f32 to vector<2x128xf32>
    %217 = arith.addf %216, %215 : vector<2x128xf32>
    %218 = arith.divf %216, %217 : vector<2x128xf32>
    %219 = math.tanh %213 : vector<2x128xf32>
    %220 = arith.select %18, %219, %218 : vector<2x128xi1>, vector<2x128xf32>
    %221 = vector.extract_strided_slice %220 {offsets = [0, 0], sizes = [2, 32], strides = [1, 1]} : vector<2x128xf32> to vector<2x32xf32>
    %222 = vector.extract_strided_slice %220 {offsets = [0, 32], sizes = [2, 32], strides = [1, 1]} : vector<2x128xf32> to vector<2x32xf32>
    %223 = vector.extract_strided_slice %220 {offsets = [0, 64], sizes = [2, 32], strides = [1, 1]} : vector<2x128xf32> to vector<2x32xf32>
    %224 = vector.extract_strided_slice %220 {offsets = [0, 96], sizes = [2, 32], strides = [1, 1]} : vector<2x128xf32> to vector<2x32xf32>
    %225 = arith.mulf %222, %185 : vector<2x32xf32>
    %226 = arith.mulf %221, %223 : vector<2x32xf32>
    %227 = arith.addf %225, %226 : vector<2x32xf32>
    %228 = math.tanh %227 : vector<2x32xf32>
    %229 = arith.mulf %224, %228 : vector<2x32xf32>
    %230 = vector.extract_strided_slice %9 {offsets = [5, 0, 0], sizes = [1, 2, 128], strides = [1, 1, 1]} : vector<8x2x128xf32> to vector<1x2x128xf32>
    %231 = vector.shape_cast %230 : vector<1x2x128xf32> to vector<2x128xf32>
    %232 = arith.truncf %208 : vector<2x32xf32> to vector<2x32xbf16>
    %cst_32 = arith.constant dense<0.000000e+00> : vector<2x128xf32>
    %233 = tpu.matmul %232, %10, %cst_32 {dimension_numbers = #tpu.dot_dimension_numbers<[1], [0], [0], [1], [0, 0, 1, 1], [], []>} : vector<2x32xbf16>, vector<32x128xbf16>, vector<2x128xf32> -> vector<2x128xf32>
    %234 = arith.addf %231, %233 : vector<2x128xf32>
    %235 = arith.negf %234 : vector<2x128xf32>
    %236 = math.exp %235 : vector<2x128xf32>
    %cst_33 = arith.constant 1.000000e+00 : f32
    %237 = vector.broadcast %cst_33 : f32 to vector<2x128xf32>
    %238 = arith.addf %237, %236 : vector<2x128xf32>
    %239 = arith.divf %237, %238 : vector<2x128xf32>
    %240 = math.tanh %234 : vector<2x128xf32>
    %241 = arith.select %18, %240, %239 : vector<2x128xi1>, vector<2x128xf32>
    %242 = vector.extract_strided_slice %241 {offsets = [0, 0], sizes = [2, 32], strides = [1, 1]} : vector<2x128xf32> to vector<2x32xf32>
    %243 = vector.extract_strided_slice %241 {offsets = [0, 32], sizes = [2, 32], strides = [1, 1]} : vector<2x128xf32> to vector<2x32xf32>
    %244 = vector.extract_strided_slice %241 {offsets = [0, 64], sizes = [2, 32], strides = [1, 1]} : vector<2x128xf32> to vector<2x32xf32>
    %245 = vector.extract_strided_slice %241 {offsets = [0, 96], sizes = [2, 32], strides = [1, 1]} : vector<2x128xf32> to vector<2x32xf32>
    %246 = arith.mulf %243, %206 : vector<2x32xf32>
    %247 = arith.mulf %242, %244 : vector<2x32xf32>
    %248 = arith.addf %246, %247 : vector<2x32xf32>
    %249 = math.tanh %248 : vector<2x32xf32>
    %250 = arith.mulf %245, %249 : vector<2x32xf32>
    %251 = tpu.concatenate %250, %229 in 1 : vector<2x32xf32>, vector<2x32xf32> -> vector<2x64xf32>
    %252 = arith.truncf %251 : vector<2x64xf32> to vector<2x64xbf16>
    %cst_34 = arith.constant dense<0.000000e+00> : vector<2x128xf32>
    %253 = tpu.matmul %252, %11, %cst_34 {dimension_numbers = #tpu.dot_dimension_numbers<[1], [0], [0], [1], [0, 0, 1, 1], [], []>} : vector<2x64xbf16>, vector<64x128xbf16>, vector<2x128xf32> -> vector<2x128xf32>
    %254 = vector.broadcast %12 : vector<1x128xf32> to vector<2x128xf32>
    %255 = arith.addf %253, %254 : vector<2x128xf32>
    %256 = arith.negf %255 : vector<2x128xf32>
    %257 = math.exp %256 : vector<2x128xf32>
    %cst_35 = arith.constant 1.000000e+00 : f32
    %258 = vector.broadcast %cst_35 : f32 to vector<2x128xf32>
    %259 = arith.addf %258, %257 : vector<2x128xf32>
    %260 = arith.divf %258, %259 : vector<2x128xf32>
    %261 = math.tanh %255 : vector<2x128xf32>
    %262 = arith.select %18, %261, %260 : vector<2x128xi1>, vector<2x128xf32>
    %263 = vector.extract_strided_slice %262 {offsets = [0, 0], sizes = [2, 32], strides = [1, 1]} : vector<2x128xf32> to vector<2x32xf32>
    %264 = vector.extract_strided_slice %262 {offsets = [0, 32], sizes = [2, 32], strides = [1, 1]} : vector<2x128xf32> to vector<2x32xf32>
    %265 = vector.extract_strided_slice %262 {offsets = [0, 64], sizes = [2, 32], strides = [1, 1]} : vector<2x128xf32> to vector<2x32xf32>
    %266 = vector.extract_strided_slice %262 {offsets = [0, 96], sizes = [2, 32], strides = [1, 1]} : vector<2x128xf32> to vector<2x32xf32>
    %267 = arith.mulf %264, %227 : vector<2x32xf32>
    %268 = arith.mulf %263, %265 : vector<2x32xf32>
    %269 = arith.addf %267, %268 : vector<2x32xf32>
    %270 = math.tanh %269 : vector<2x32xf32>
    %271 = arith.mulf %266, %270 : vector<2x32xf32>
    %272 = vector.extract_strided_slice %9 {offsets = [6, 0, 0], sizes = [1, 2, 128], strides = [1, 1, 1]} : vector<8x2x128xf32> to vector<1x2x128xf32>
    %273 = vector.shape_cast %272 : vector<1x2x128xf32> to vector<2x128xf32>
    %274 = arith.truncf %250 : vector<2x32xf32> to vector<2x32xbf16>
    %cst_36 = arith.constant dense<0.000000e+00> : vector<2x128xf32>
    %275 = tpu.matmul %274, %10, %cst_36 {dimension_numbers = #tpu.dot_dimension_numbers<[1], [0], [0], [1], [0, 0, 1, 1], [], []>} : vector<2x32xbf16>, vector<32x128xbf16>, vector<2x128xf32> -> vector<2x128xf32>
    %276 = arith.addf %273, %275 : vector<2x128xf32>
    %277 = arith.negf %276 : vector<2x128xf32>
    %278 = math.exp %277 : vector<2x128xf32>
    %cst_37 = arith.constant 1.000000e+00 : f32
    %279 = vector.broadcast %cst_37 : f32 to vector<2x128xf32>
    %280 = arith.addf %279, %278 : vector<2x128xf32>
    %281 = arith.divf %279, %280 : vector<2x128xf32>
    %282 = math.tanh %276 : vector<2x128xf32>
    %283 = arith.select %18, %282, %281 : vector<2x128xi1>, vector<2x128xf32>
    %284 = vector.extract_strided_slice %283 {offsets = [0, 0], sizes = [2, 32], strides = [1, 1]} : vector<2x128xf32> to vector<2x32xf32>
    %285 = vector.extract_strided_slice %283 {offsets = [0, 32], sizes = [2, 32], strides = [1, 1]} : vector<2x128xf32> to vector<2x32xf32>
    %286 = vector.extract_strided_slice %283 {offsets = [0, 64], sizes = [2, 32], strides = [1, 1]} : vector<2x128xf32> to vector<2x32xf32>
    %287 = vector.extract_strided_slice %283 {offsets = [0, 96], sizes = [2, 32], strides = [1, 1]} : vector<2x128xf32> to vector<2x32xf32>
    %288 = arith.mulf %285, %248 : vector<2x32xf32>
    %289 = arith.mulf %284, %286 : vector<2x32xf32>
    %290 = arith.addf %288, %289 : vector<2x32xf32>
    %291 = math.tanh %290 : vector<2x32xf32>
    %292 = arith.mulf %287, %291 : vector<2x32xf32>
    %293 = tpu.concatenate %292, %271 in 1 : vector<2x32xf32>, vector<2x32xf32> -> vector<2x64xf32>
    %294 = arith.truncf %293 : vector<2x64xf32> to vector<2x64xbf16>
    %cst_38 = arith.constant dense<0.000000e+00> : vector<2x128xf32>
    %295 = tpu.matmul %294, %11, %cst_38 {dimension_numbers = #tpu.dot_dimension_numbers<[1], [0], [0], [1], [0, 0, 1, 1], [], []>} : vector<2x64xbf16>, vector<64x128xbf16>, vector<2x128xf32> -> vector<2x128xf32>
    %296 = vector.broadcast %12 : vector<1x128xf32> to vector<2x128xf32>
    %297 = arith.addf %295, %296 : vector<2x128xf32>
    %298 = arith.negf %297 : vector<2x128xf32>
    %299 = math.exp %298 : vector<2x128xf32>
    %cst_39 = arith.constant 1.000000e+00 : f32
    %300 = vector.broadcast %cst_39 : f32 to vector<2x128xf32>
    %301 = arith.addf %300, %299 : vector<2x128xf32>
    %302 = arith.divf %300, %301 : vector<2x128xf32>
    %303 = math.tanh %297 : vector<2x128xf32>
    %304 = arith.select %18, %303, %302 : vector<2x128xi1>, vector<2x128xf32>
    %305 = vector.extract_strided_slice %304 {offsets = [0, 0], sizes = [2, 32], strides = [1, 1]} : vector<2x128xf32> to vector<2x32xf32>
    %306 = vector.extract_strided_slice %304 {offsets = [0, 32], sizes = [2, 32], strides = [1, 1]} : vector<2x128xf32> to vector<2x32xf32>
    %307 = vector.extract_strided_slice %304 {offsets = [0, 64], sizes = [2, 32], strides = [1, 1]} : vector<2x128xf32> to vector<2x32xf32>
    %308 = vector.extract_strided_slice %304 {offsets = [0, 96], sizes = [2, 32], strides = [1, 1]} : vector<2x128xf32> to vector<2x32xf32>
    %309 = arith.mulf %306, %269 : vector<2x32xf32>
    %310 = arith.mulf %305, %307 : vector<2x32xf32>
    %311 = arith.addf %309, %310 : vector<2x32xf32>
    %312 = math.tanh %311 : vector<2x32xf32>
    %313 = arith.mulf %308, %312 : vector<2x32xf32>
    %314 = vector.extract_strided_slice %9 {offsets = [7, 0, 0], sizes = [1, 2, 128], strides = [1, 1, 1]} : vector<8x2x128xf32> to vector<1x2x128xf32>
    %315 = vector.shape_cast %314 : vector<1x2x128xf32> to vector<2x128xf32>
    %316 = arith.truncf %292 : vector<2x32xf32> to vector<2x32xbf16>
    %cst_40 = arith.constant dense<0.000000e+00> : vector<2x128xf32>
    %317 = tpu.matmul %316, %10, %cst_40 {dimension_numbers = #tpu.dot_dimension_numbers<[1], [0], [0], [1], [0, 0, 1, 1], [], []>} : vector<2x32xbf16>, vector<32x128xbf16>, vector<2x128xf32> -> vector<2x128xf32>
    %318 = arith.addf %315, %317 : vector<2x128xf32>
    %319 = arith.negf %318 : vector<2x128xf32>
    %320 = math.exp %319 : vector<2x128xf32>
    %cst_41 = arith.constant 1.000000e+00 : f32
    %321 = vector.broadcast %cst_41 : f32 to vector<2x128xf32>
    %322 = arith.addf %321, %320 : vector<2x128xf32>
    %323 = arith.divf %321, %322 : vector<2x128xf32>
    %324 = math.tanh %318 : vector<2x128xf32>
    %325 = arith.select %18, %324, %323 : vector<2x128xi1>, vector<2x128xf32>
    %326 = vector.extract_strided_slice %325 {offsets = [0, 0], sizes = [2, 32], strides = [1, 1]} : vector<2x128xf32> to vector<2x32xf32>
    %327 = vector.extract_strided_slice %325 {offsets = [0, 32], sizes = [2, 32], strides = [1, 1]} : vector<2x128xf32> to vector<2x32xf32>
    %328 = vector.extract_strided_slice %325 {offsets = [0, 64], sizes = [2, 32], strides = [1, 1]} : vector<2x128xf32> to vector<2x32xf32>
    %329 = vector.extract_strided_slice %325 {offsets = [0, 96], sizes = [2, 32], strides = [1, 1]} : vector<2x128xf32> to vector<2x32xf32>
    %330 = arith.mulf %327, %290 : vector<2x32xf32>
    %331 = arith.mulf %326, %328 : vector<2x32xf32>
    %332 = arith.addf %330, %331 : vector<2x32xf32>
    %333 = math.tanh %332 : vector<2x32xf32>
    %334 = arith.mulf %329, %333 : vector<2x32xf32>
    %335 = tpu.concatenate %334, %313 in 1 : vector<2x32xf32>, vector<2x32xf32> -> vector<2x64xf32>
    %336 = arith.truncf %335 : vector<2x64xf32> to vector<2x64xbf16>
    %cst_42 = arith.constant dense<0.000000e+00> : vector<2x128xf32>
    %337 = tpu.matmul %336, %11, %cst_42 {dimension_numbers = #tpu.dot_dimension_numbers<[1], [0], [0], [1], [0, 0, 1, 1], [], []>} : vector<2x64xbf16>, vector<64x128xbf16>, vector<2x128xf32> -> vector<2x128xf32>
    %338 = vector.broadcast %12 : vector<1x128xf32> to vector<2x128xf32>
    %339 = arith.addf %337, %338 : vector<2x128xf32>
    %340 = arith.negf %339 : vector<2x128xf32>
    %341 = math.exp %340 : vector<2x128xf32>
    %cst_43 = arith.constant 1.000000e+00 : f32
    %342 = vector.broadcast %cst_43 : f32 to vector<2x128xf32>
    %343 = arith.addf %342, %341 : vector<2x128xf32>
    %344 = arith.divf %342, %343 : vector<2x128xf32>
    %345 = math.tanh %339 : vector<2x128xf32>
    %346 = arith.select %18, %345, %344 : vector<2x128xi1>, vector<2x128xf32>
    %347 = vector.extract_strided_slice %346 {offsets = [0, 0], sizes = [2, 32], strides = [1, 1]} : vector<2x128xf32> to vector<2x32xf32>
    %348 = vector.extract_strided_slice %346 {offsets = [0, 32], sizes = [2, 32], strides = [1, 1]} : vector<2x128xf32> to vector<2x32xf32>
    %349 = vector.extract_strided_slice %346 {offsets = [0, 64], sizes = [2, 32], strides = [1, 1]} : vector<2x128xf32> to vector<2x32xf32>
    %350 = vector.extract_strided_slice %346 {offsets = [0, 96], sizes = [2, 32], strides = [1, 1]} : vector<2x128xf32> to vector<2x32xf32>
    %351 = arith.mulf %348, %311 : vector<2x32xf32>
    %352 = arith.mulf %347, %349 : vector<2x32xf32>
    %353 = arith.addf %351, %352 : vector<2x32xf32>
    %354 = math.tanh %353 : vector<2x32xf32>
    %355 = arith.mulf %350, %354 : vector<2x32xf32>
    %c0_44 = arith.constant 0 : index
    %c0_45 = arith.constant 0 : index
    %356 = vector.load %arg6[%c0_44, %c0_45] : memref<1x32xf32, #tpu.memory_space<vmem>>, vector<1x32xf32>
    %357 = vector.broadcast %356 : vector<1x32xf32> to vector<2x32xf32>
    %358 = arith.mulf %355, %357 : vector<2x32xf32>
    %cst_46 = arith.constant dense<0.000000e+00> : vector<2xf32>
    %359 = vector.multi_reduction <add>, %358, %cst_46 [1] : vector<2x32xf32> to vector<2xf32>
    %360 = vector.shape_cast %359 : vector<2xf32> to vector<2x1xf32>
    %c0_47 = arith.constant 0 : index
    %c0_48 = arith.constant 0 : index
    %361 = vector.load %arg7[%c0_47, %c0_48] : memref<1x1xf32, #tpu.memory_space<vmem>>, vector<1x1xf32>
    %362 = vector.broadcast %361 : vector<1x1xf32> to vector<2x1xf32>
    %363 = arith.addf %360, %362 : vector<2x1xf32>
    %c0_49 = arith.constant 0 : index
    %c0_50 = arith.constant 0 : index
    %364 = vector.load %arg8[%c0_49, %c0_50] : memref<2x1xf32, #tpu.memory_space<vmem>>, vector<2x1xf32>
    tpu.vector_store %arg8[%c0_49, %c0_50], %363 {strides = array<i32>} : memref<2x1xf32, #tpu.memory_space<vmem>>, vector<2x1xf32>,
    return
  }
}

</mosaic_0001>

<bundles_post_ra>
// kernel: tpu_custom_call.1
= control target key start
LH: loop header
LB: loop body
LE: loop exit
PB: predicated region body
PF: predicated region fallthrough
CT: control target
= control target key end

     0   :  { %s2317_s0 = inlined_call_operand.vmem [shape: f32[8,2,1], index: 0, kind: input, shape index: {}]   ;;  %s2318_s1 = inlined_call_operand.vmem [shape: f32[1,128], index: 1, kind: input, shape index: {}]   ;;  %s2319_s2 = inlined_call_operand.vmem [shape: bf16[32,128], index: 2, kind: input, shape index: {}]   ;;  %s2320_s3 = inlined_call_operand.vmem [shape: f32[1,128], index: 3, kind: input, shape index: {}]   ;;  %s2321_s4 = inlined_call_operand.hbm [shape: bf16[64,128], index: 4, kind: input, shape index: {}]   ;;  %s2322_s5 = inlined_call_operand.vmem [shape: f32[1,128], index: 5, kind: input, shape index: {}]   ;;  %s2323_s6 = inlined_call_operand.vmem [shape: f32[1,32], index: 6, kind: input, shape index: {}]   ;;  %s2324_s7 = inlined_call_operand.<no memory space> [shape: f32[1,1], index: 7, kind: input, shape index: {}]   ;;  %s2325_s8 = inlined_call_operand.vmem [shape: f32[2,1], index: 8, kind: output, shape index: {}]  }
   0x1   :  { %v13_v0 = vstv %s2324_s7 }
   0x2   :  { %14 = vst [vmem:[#allocation2] sm:$0x1] %v13_v0 }
   0x3   :  { %15 = vsyncpa [#allocation4], 0  ;;  %s1857_s29 = smov [#allocation3]  }
   0x4   :  { %s29_s30 = sshll.u32 %s1857_s29, 4  ;;  %s30_s30 = int_to_ptr.vmem [resolvable:$true] %s29_s30 }
   0x5   :  { %s1843_s9 = scalar_lea.vmem %s30_s30, 512  ;;  %p1848_p1 = scmp.lt.s32.totalorder %s30_s30, %s30_s30 }
   0x6   :  { %p1844_p0 = scmp.ne.s32.totalorder %s30_s30, %s1843_s9  ;;  %p1849_p2 = scmp.lt.s32.totalorder %s1843_s9, %s1843_s9 }
   0x8   :  { %p1850_p3 = por %p1849_p2, %p1848_p1 }
   0xa   :  { %p1851_p4 = pnand %p1850_p3, %p1844_p0 }
   0xc   :  { %1854 = shalt.err (!%p1851_p4)
}
   0xd   :  { %s1858_s10 = smov 64   ;;  %s1859_s11 = smov 4  }
   0xe   :  { %35 = dma.hbm_to_vmem [thread:$0]  %s2321_s4, 512, %s30_s30, [#allocation4], %s1858_s10, %s1858_s10, %s1859_s11  }
   0xf   :  { %1855 = dma.done.wait [#allocation4], 512  }
  0x10   :  { %1856 = vsyncadd [#allocation4], 4294966784  ;;  %v1860_v1 = vmov 0.0   ;;  %vm1861_vm0 = vmmov 0   ;;  %v1862_v2 = vmov 0   ;;  %v1927_v3 = vld [vmem:[%s2319_s2 + $0x8] sm:$0xff]   ;;  %v137_v19 = vlaneseq }
  0x11   :  { %1525 = vmatprep.subr.bf16.mxu1 %v1860_v1  ;;  %1529 = vmatprep.mubr.msk.bf16.mxu1 %vm1861_vm0, %v1860_v1  ;;  %v1933_v4 = vld [vmem:[%s2319_s2] sm:$0xff]   ;;  %s1863_s21 = smov 32   ;;  %v1973_v31 = vld [vmem:[#allocation3 + $0x10] sm:$0xff]   ;;  %v1977_v33 = vld [vmem:[#allocation3 + $0x8] sm:$0xff]   ;;  %vm154_vm4 = vcmask 261120   ;;  %vm260_vm5 = vcmask 523264  }
  0x12   :  { %1693 = vset.pattern.permute.xlu0 %v1862_v2  ;;  %1545 = vmatprep.subr.bf16.mxu0 %v1860_v1  ;;  %v46_v5 = vld [vmem:[%s2317_s0] sm:$0x3]  ;;  %v138_v20 = vand.u32 127, %v137_v19  ;;  %v47_v38 = vld [vmem:[%s2317_s0 + $0x2] sm:$0x3]  ;;  %s1864_s18 = smov 96  }
  0x13   :  { %1549 = vmatprep.mubr.msk.bf16.mxu0 %vm1861_vm0, %v1860_v1  ;;  %1526 = vmatpush3.bf16.msra.mxu1 %v1927_v3  ;;  %v1950_v6 = vld [vmem:[%s2318_s1] ss:$0 sm:$0xff]  ;;  %v1983_v34 = vld [vmem:[#allocation3] sm:$0xff]   ;;  %vm1400_vm6 = vcmask 254976   ;;  %vm1412_vm7 = vcmask 1024  }
  0x14   :  { %1546 = vmatpush3.bf16.msra.mxu0 %v1927_v3  ;;  %1527 = vmatprep.subr.bf16.mxu1 %v1860_v1  ;;  %v1956_v9 = vld [vmem:[%s2320_s3] ss:$0 sm:$0xff]  ;;  %vm139_vm1 = vcmp.ge.s32.totalorder %v138_v20, 64  ;;  %vm140_vm2 = vcmp.lt.s32.totalorder %v138_v20, 96 }
  0x15   :  { %57 = vperm.xlu0 %1693, %v46_v5   ;;  %1547 = vmatprep.subr.bf16.mxu0 %v1860_v1  ;;  %vm1959_vm3 = vmand %vm139_vm1, %vm140_vm2  ;;  %v1970_v30 = vld [vmem:[#allocation3 + $0x18] sm:$0xff]  }
  0x16   :  { %v2016_v46 = vld [vmem:[%s2322_s5] ss:$0 sm:$0xff] }
  0x17   :  { %1528 = vmatpush3.bf16.msra.mxu1 %v1933_v4 }
  0x18   :  { %1548 = vmatpush3.bf16.msra.mxu0 %v1933_v4  ;;  %1533 = vmatprep.subr.bf16.mxu1 %v1860_v1 }
  0x19   :  { %1553 = vmatprep.subr.bf16.mxu0 %v1860_v1 }
  0x1a   :  { %1530 = vmatmul.mubr.bf16.vlgmr.msra.gmra.mxu1 %v1862_v2 }
  0x1b   :  { %1541 = vmatprep.mubr.msk.bf16.mxu1 %vm1861_vm0, %v1860_v1  ;;  %1534 = vmatpush3.bf16.msra.mxu1 %v1970_v30 }
  0x1c   :  { %1535 = vmatprep.subr.bf16.mxu1 %v1860_v1 }
  0x1f   :  { %1536 = vmatpush3.bf16.msra.mxu1 %v1973_v31 }
  0x20   :  { %1537 = vmatprep.subr.bf16.mxu1 %v1860_v1 }
  0x23   :  { %1538 = vmatpush3.bf16.msra.mxu1 %v1977_v33 }
  0x24   :  { %1539 = vmatprep.subr.bf16.mxu1 %v1860_v1 }
  0x27   :  { %1540 = vmatpush3.bf16.msra.mxu1 %v1983_v34 }
  0x28   :  { %1565 = vmatprep.subr.bf16.mxu1 %v1860_v1 }
  0x90   :  { %v58_v7 = vpop.permute.xlu0 %57 }
  0x91   :  { %v101_v8 = vmul.f32 %v1950_v6, %v58_v7 }
  0x93   :  { %v116_v10 = vadd.f32 %v1956_v9, %v101_v8 }
  0xda   :  { %v192_v11 = vpop.f32.mrf.mxu1 }
  0xdb   :  { %v198_v12 = vadd.f32 %v192_v11, %v116_v10 }
  0xdc   :  { %v1531_v13 = vpop.f32.mrf.mxu1 }
  0xdd   :  { %v1423_v14 = vmul.f32 -1.442695, %v198_v12 }
  0xde   :  { %v195_v15 = vpop.f32.mrf.mxu1 }
  0xdf   :  { %1700 = vpow2.f32 %v1423_v14 }
  0xe0   :  { %v1532_v16 = vpop.f32.mrf.mxu1  ;;  %1702 = vtanh.f32 %v198_v12 }
  0xec   :  { %v1701_v17 = vpop.eup %1700 }
  0xed   :  { %v202_v18 = vadd.f32 1.0, %v1701_v17  ;;  %v1703_v22 = vpop.eup %1702 }
  0xef   :  { %1704 = vrcp.f32 %v202_v18 }
  0xfc   :  { %v1705_v23 = vpop.eup %1704 }
  0xfd   :  { %v206_v24 = vsel %vm1959_vm3, %v1703_v22, %v1705_v23 }
  0xfe   :  { %209 = vrot.lane.b32.xlu0 %v206_v24, %s1858_s10  ;;  %v207_v27 = vmul.f32 0.0, %v206_v24 }
 0x170   :  { %v210_v25 = vpop.permute.xlu0 %209 }
 0x171   :  { %v212_v26 = vmul.f32 %v210_v25, %v206_v24 }
 0x173   :  { %214 = vrot.lane.b32.xlu1 %v212_v26, %s1863_s21 }
 0x1e5   :  { %v215_v28 = vpop.permute.xlu1 %214 }
 0x1e6   :  { %v1967_v29 = vadd.f32 %v215_v28, %v207_v27  ;;  %v48_v28 = vld [vmem:[%s2317_s0 + $0x4] sm:$0x3] }
 0x1e8   :  { %1706 = vtanh.f32 %v1967_v29 }
 0x1f5   :  { %v1707_v32 = vpop.eup %1706 }
 0x1f6   :  { %220 = vrot.lane.b32.xlu1 %v1707_v32, %s1858_s10 }
 0x268   :  { %v221_v35 = vpop.permute.xlu1 %220 }
 0x269   :  { %v223_v36 = vmul.f32 %v221_v35, %v206_v24 }
 0x26b   :  { %v329_v37 = vpack.c.bf16 %v223_v36, %v223_v36  ;;  %225 = vrot.lane.b32.xlu0 %v223_v36, %s1863_s21 }
 0x26d   :  { %331 = vrot.lane.b32.xlu1 %v329_v37, %s1863_s21 }
 0x26f   :  { %62 = vperm.xlu0 %1693, %v47_v38  }
 0x2dd   :  { %v226_v39 = vpop.permute.xlu0 %225 }
 0x2de   :  { %v228_v40 = vsel %vm154_vm4, %v226_v39, 0.0 }
 0x2df   :  { %v229_v41 = vpack.c.bf16 %v228_v40, %v228_v40  ;;  %v332_v42 = vpop.permute.xlu1 %331 }
 0x2e0   :  { %1550 = vmatmul.mubr.msk.bf16.vlgmr.msra.gmra.mxu0 %vm154_vm4, %v332_v42 }
 0x2e1   :  { %1542 = vmatmul.mubr.msk.bf16.vlgmr.msra.gmra.mxu1 %vm260_vm5, %v229_v41  ;;  %1554 = vmatpush3.bf16.msra.mxu0 %v1970_v30 }
 0x2e2   :  { %1555 = vmatprep.subr.bf16.mxu0 %v1860_v1  ;;  %1566 = vmatpush3.bf16.msra.mxu1 %v1927_v3 }
 0x2e3   :  { %1567 = vmatprep.subr.bf16.mxu1 %v1860_v1  ;;  %1561 = vmatprep.mubr.msk.bf16.mxu0 %vm1861_vm0, %v1860_v1 }
 0x2e4   :  { %1569 = vmatprep.mubr.msk.bf16.mxu1 %vm1861_vm0, %v1860_v1 }
 0x2e5   :  { %1556 = vmatpush3.bf16.msra.mxu0 %v1973_v31 }
 0x2e6   :  { %1557 = vmatprep.subr.bf16.mxu0 %v1860_v1  ;;  %1568 = vmatpush3.bf16.msra.mxu1 %v1933_v4 }
 0x2e7   :  { %1573 = vmatprep.subr.bf16.mxu1 %v1860_v1 }
 0x2e9   :  { %1558 = vmatpush3.bf16.msra.mxu0 %v1977_v33 }
 0x2ea   :  { %1559 = vmatprep.subr.bf16.mxu0 %v1860_v1  ;;  %v63_v43 = vpop.permute.xlu0 %62 }
 0x2eb   :  { %v102_v44 = vmul.f32 %v1950_v6, %v63_v43 }
 0x2ed   :  { %1560 = vmatpush3.bf16.msra.mxu0 %v1983_v34  ;;  %v117_v45 = vadd.f32 %v1956_v9, %v102_v44 }
 0x2ee   :  { %1585 = vmatprep.subr.bf16.mxu0 %v1860_v1 }
 0x3a0   :  { %v370_v47 = vpop.f32.mrf.mxu0 }
 0x3a1   :  { %v376_v48 = vadd.f32 %v370_v47, %v117_v45  ;;  %v298_v49 = vpop.f32.mrf.mxu1 }
 0x3a2   :  { %v299_v50 = vadd.f32 %v2016_v46, %v298_v49  ;;  %v1551_v51 = vpop.f32.mrf.mxu0 }
 0x3a3   :  { %v1432_v52 = vmul.f32 -1.442695, %v376_v48  ;;  %v1543_v53 = vpop.f32.mrf.mxu1 }
 0x3a4   :  { %v1430_v54 = vmul.f32 -1.442695, %v299_v50  ;;  %v373_v55 = vpop.f32.mrf.mxu0 }
 0x3a5   :  { %1708 = vpow2.f32 %v1432_v52  ;;  %v301_v56 = vpop.f32.mrf.mxu1 }
 0x3a6   :  { %1710 = vpow2.f32 %v1430_v54  ;;  %v1552_v57 = vpop.f32.mrf.mxu0 }
 0x3a7   :  { %v1544_v58 = vpop.f32.mrf.mxu1  ;;  %1712 = vtanh.f32 %v376_v48 }
 0x3a8   :  { %1714 = vtanh.f32 %v299_v50 }
 0x3b2   :  { %v1709_v59 = vpop.eup %1708 }
 0x3b3   :  { %v1711_v60 = vpop.eup %1710  ;;  %v380_v61 = vadd.f32 1.0, %v1709_v59 }
 0x3b4   :  { %v307_v62 = vadd.f32 1.0, %v1711_v60  ;;  %v1713_v63 = vpop.eup %1712 }
 0x3b5   :  { %1716 = vrcp.f32 %v380_v61  ;;  %v1715_v0 = vpop.eup %1714 }
 0x3b6   :  { %1718 = vrcp.f32 %v307_v62 }
 0x3c2   :  { %v1717_v2 = vpop.eup %1716 }
 0x3c3   :  { %v1719_v5 = vpop.eup %1718  ;;  %v384_v7 = vsel %vm1959_vm3, %v1713_v63, %v1717_v2 }
 0x3c4   :  { %387 = vrot.lane.b32.xlu0 %v384_v7, %s1858_s10  ;;  %v311_v8 = vsel %vm1959_vm3, %v1715_v0, %v1719_v5  ;;  %v385_v14 = vmul.f32 %v384_v7, %v1967_v29 }
 0x3c5   :  { %314 = vrot.lane.b32.xlu1 %v311_v8, %s1858_s10  ;;  %v312_v16 = vmul.f32 0.0, %v311_v8 }
 0x436   :  { %v388_v10 = vpop.permute.xlu0 %387 }
 0x437   :  { %v390_v11 = vmul.f32 %v388_v10, %v384_v7  ;;  %v315_v12 = vpop.permute.xlu1 %314 }
 0x438   :  { %v317_v13 = vmul.f32 %v315_v12, %v311_v8 }
 0x439   :  { %392 = vrot.lane.b32.xlu0 %v390_v11, %s1863_s21 }
 0x43a   :  { %319 = vrot.lane.b32.xlu1 %v317_v13, %s1863_s21 }
 0x4ab   :  { %v393_v15 = vpop.permute.xlu0 %392 }
 0x4ac   :  { %v2028_v17 = vadd.f32 %v393_v15, %v385_v14  ;;  %v320_v18 = vpop.permute.xlu1 %319 }
 0x4ad   :  { %v2030_v19 = vadd.f32 %v320_v18, %v312_v16 }
 0x4ae   :  { %1720 = vtanh.f32 %v2028_v17 }
 0x4af   :  { %1722 = vtanh.f32 %v2030_v19 }
 0x4bb   :  { %v1721_v20 = vpop.eup %1720 }
 0x4bc   :  { %v1723_v22 = vpop.eup %1722  ;;  %398 = vrot.lane.b32.xlu0 %v1721_v20, %s1858_s10 }
 0x4bd   :  { %325 = vrot.lane.b32.xlu1 %v1723_v22, %s1858_s10  ;;  %v49_v22 = vld [vmem:[%s2317_s0 + $0x6] sm:$0x3] }
 0x52e   :  { %v399_v23 = vpop.permute.xlu0 %398 }
 0x52f   :  { %v401_v24 = vmul.f32 %v399_v23, %v384_v7  ;;  %v326_v25 = vpop.permute.xlu1 %325 }
 0x530   :  { %v328_v26 = vmul.f32 %v326_v25, %v311_v8 }
 0x531   :  { %403 = vrot.lane.b32.xlu1 %v401_v24, %s1863_s21  ;;  %v480_v27 = vpack.c.bf16 %v401_v24, %v401_v24 }
 0x532   :  { %407 = vrot.lane.b32.xlu0 %v328_v26, %s1858_s10 }
 0x535   :  { %482 = vrot.lane.b32.xlu1 %v480_v27, %s1863_s21 }
 0x536   :  { %67 = vperm.xlu0 %1693, %v48_v28  }
 0x5a3   :  { %v404_v29 = vpop.permute.xlu1 %403 }
 0x5a4   :  { %v408_v32 = vpop.permute.xlu0 %407 }
 0x5a5   :  { %v410_v35 = vsel %vm154_vm4, %v404_v29, %v408_v32 }
 0x5a6   :  { %v411_v36 = vpack.c.bf16 %v410_v35, %v410_v35 }
 0x5a7   :  { %v483_v37 = vpop.permute.xlu1 %482 }
 0x5a8   :  { %1562 = vmatmul.mubr.msk.bf16.vlgmr.msra.gmra.mxu0 %vm260_vm5, %v411_v36  ;;  %1570 = vmatmul.mubr.msk.bf16.vlgmr.msra.gmra.mxu1 %vm154_vm4, %v483_v37 }
 0x5a9   :  { %1574 = vmatpush3.bf16.msra.mxu1 %v1970_v30  ;;  %1586 = vmatpush3.bf16.msra.mxu0 %v1927_v3 }
 0x5aa   :  { %1575 = vmatprep.subr.bf16.mxu1 %v1860_v1  ;;  %1587 = vmatprep.subr.bf16.mxu0 %v1860_v1 }
 0x5ab   :  { %1581 = vmatprep.mubr.msk.bf16.mxu1 %vm1861_vm0, %v1860_v1  ;;  %1589 = vmatprep.mubr.msk.bf16.mxu0 %vm1861_vm0, %v1860_v1 }
 0x5ad   :  { %1576 = vmatpush3.bf16.msra.mxu1 %v1973_v31  ;;  %1588 = vmatpush3.bf16.msra.mxu0 %v1933_v4 }
 0x5ae   :  { %1577 = vmatprep.subr.bf16.mxu1 %v1860_v1  ;;  %1593 = vmatprep.subr.bf16.mxu0 %v1860_v1 }
 0x5b1   :  { %1578 = vmatpush3.bf16.msra.mxu1 %v1977_v33  ;;  %v68_v38 = vpop.permute.xlu0 %67 }
 0x5b2   :  { %1579 = vmatprep.subr.bf16.mxu1 %v1860_v1  ;;  %v103_v39 = vmul.f32 %v1950_v6, %v68_v38 }
 0x5b4   :  { %v118_v40 = vadd.f32 %v1956_v9, %v103_v39 }
 0x5b5   :  { %1580 = vmatpush3.bf16.msra.mxu1 %v1983_v34 }
 0x5b6   :  { %1605 = vmatprep.subr.bf16.mxu1 %v1860_v1 }
 0x668   :  { %v449_v41 = vpop.f32.mrf.mxu0  ;;  %v521_v42 = vpop.f32.mrf.mxu1 }
 0x669   :  { %v450_v43 = vadd.f32 %v2016_v46, %v449_v41  ;;  %v527_v44 = vadd.f32 %v521_v42, %v118_v40 }
 0x66a   :  { %v1563_v45 = vpop.f32.mrf.mxu0  ;;  %v1571_v47 = vpop.f32.mrf.mxu1 }
 0x66b   :  { %v1434_v48 = vmul.f32 -1.442695, %v450_v43  ;;  %v1436_v49 = vmul.f32 -1.442695, %v527_v44 }
 0x66c   :  { %v452_v50 = vpop.f32.mrf.mxu0  ;;  %v524_v51 = vpop.f32.mrf.mxu1 }
 0x66d   :  { %1724 = vpow2.f32 %v1434_v48 }
 0x66e   :  { %1726 = vpow2.f32 %v1436_v49  ;;  %v1564_v52 = vpop.f32.mrf.mxu0  ;;  %v1572_v53 = vpop.f32.mrf.mxu1 }
 0x66f   :  { %1728 = vtanh.f32 %v450_v43 }
 0x670   :  { %1730 = vtanh.f32 %v527_v44 }
 0x67a   :  { %v1725_v54 = vpop.eup %1724 }
 0x67b   :  { %v1727_v55 = vpop.eup %1726  ;;  %v458_v56 = vadd.f32 1.0, %v1725_v54 }
 0x67c   :  { %v531_v57 = vadd.f32 1.0, %v1727_v55  ;;  %v1729_v58 = vpop.eup %1728 }
 0x67d   :  { %1732 = vrcp.f32 %v458_v56  ;;  %v1731_v59 = vpop.eup %1730 }
 0x67e   :  { %1734 = vrcp.f32 %v531_v57 }
 0x68a   :  { %v1733_v60 = vpop.eup %1732 }
 0x68b   :  { %v1735_v61 = vpop.eup %1734  ;;  %v462_v62 = vsel %vm1959_vm3, %v1729_v58, %v1733_v60 }
 0x68c   :  { %465 = vrot.lane.b32.xlu1 %v462_v62, %s1858_s10  ;;  %v535_v63 = vsel %vm1959_vm3, %v1731_v59, %v1735_v61  ;;  %v463_v8 = vmul.f32 %v462_v62, %v2030_v19 }
 0x68d   :  { %538 = vrot.lane.b32.xlu0 %v535_v63, %s1858_s10  ;;  %v536_v10 = vmul.f32 %v535_v63, %v2028_v17 }
 0x6fe   :  { %v466_v0 = vpop.permute.xlu1 %465 }
 0x6ff   :  { %v539_v2 = vpop.permute.xlu0 %538  ;;  %v468_v5 = vmul.f32 %v466_v0, %v462_v62 }
 0x700   :  { %v541_v7 = vmul.f32 %v539_v2, %v535_v63 }
 0x701   :  { %470 = vrot.lane.b32.xlu1 %v468_v5, %s1863_s21 }
 0x702   :  { %543 = vrot.lane.b32.xlu0 %v541_v7, %s1863_s21 }
 0x773   :  { %v471_v11 = vpop.permute.xlu1 %470 }
 0x774   :  { %v544_v12 = vpop.permute.xlu0 %543  ;;  %v2074_v13 = vadd.f32 %v471_v11, %v463_v8 }
 0x775   :  { %v2076_v14 = vadd.f32 %v544_v12, %v536_v10 }
 0x776   :  { %1736 = vtanh.f32 %v2074_v13 }
 0x777   :  { %1738 = vtanh.f32 %v2076_v14 }
 0x783   :  { %v1737_v15 = vpop.eup %1736 }
 0x784   :  { %v1739_v16 = vpop.eup %1738  ;;  %476 = vrot.lane.b32.xlu1 %v1737_v15, %s1858_s10 }
 0x785   :  { %549 = vrot.lane.b32.xlu0 %v1739_v16, %s1858_s10 }
 0x7f6   :  { %v477_v18 = vpop.permute.xlu1 %476 }
 0x7f7   :  { %v550_v19 = vpop.permute.xlu0 %549  ;;  %v479_v20 = vmul.f32 %v477_v18, %v462_v62 }
 0x7f8   :  { %v552_v17 = vmul.f32 %v550_v19, %v535_v63 }
 0x7f9   :  { %558 = vrot.lane.b32.xlu0 %v479_v20, %s1858_s10 }
 0x7fa   :  { %554 = vrot.lane.b32.xlu1 %v552_v17, %s1863_s21  ;;  %v631_v23 = vpack.c.bf16 %v552_v17, %v552_v17 }
 0x7fd   :  { %72 = vperm.xlu0 %1693, %v49_v22  }
 0x7fe   :  { %633 = vrot.lane.b32.xlu1 %v631_v23, %s1863_s21 }
 0x86b   :  { %v559_v24 = vpop.permute.xlu0 %558 }
 0x86c   :  { %v555_v25 = vpop.permute.xlu1 %554 }
 0x86d   :  { %v561_v26 = vsel %vm154_vm4, %v555_v25, %v559_v24 }
 0x86e   :  { %v562_v27 = vpack.c.bf16 %v561_v26, %v561_v26 }
 0x870   :  { %1582 = vmatmul.mubr.msk.bf16.vlgmr.msra.gmra.mxu1 %vm260_vm5, %v562_v27  ;;  %v634_v28 = vpop.permute.xlu1 %633 }
 0x871   :  { %1590 = vmatmul.mubr.msk.bf16.vlgmr.msra.gmra.mxu0 %vm154_vm4, %v634_v28  ;;  %1606 = vmatpush3.bf16.msra.mxu1 %v1927_v3 }
 0x872   :  { %1594 = vmatpush3.bf16.msra.mxu0 %v1970_v30  ;;  %1607 = vmatprep.subr.bf16.mxu1 %v1860_v1 }
 0x873   :  { %1595 = vmatprep.subr.bf16.mxu0 %v1860_v1  ;;  %1601 = vmatprep.mubr.msk.bf16.mxu0 %vm1861_vm0, %v1860_v1 }
 0x874   :  { %1609 = vmatprep.mubr.msk.bf16.mxu1 %vm1861_vm0, %v1860_v1 }
 0x875   :  { %1608 = vmatpush3.bf16.msra.mxu1 %v1933_v4 }
 0x876   :  { %1596 = vmatpush3.bf16.msra.mxu0 %v1973_v31  ;;  %1613 = vmatprep.subr.bf16.mxu1 %v1860_v1 }
 0x877   :  { %1597 = vmatprep.subr.bf16.mxu0 %v1860_v1 }
 0x878   :  { %v73_v29 = vpop.permute.xlu0 %72 }
 0x879   :  { %v104_v32 = vmul.f32 %v1950_v6, %v73_v29 }
 0x87a   :  { %1598 = vmatpush3.bf16.msra.mxu0 %v1977_v33 }
 0x87b   :  { %1599 = vmatprep.subr.bf16.mxu0 %v1860_v1  ;;  %v119_v36 = vadd.f32 %v1956_v9, %v104_v32 }
 0x87e   :  { %1600 = vmatpush3.bf16.msra.mxu0 %v1983_v34 }
 0x87f   :  { %1625 = vmatprep.subr.bf16.mxu0 %v1860_v1 }
 0x930   :  { %v600_v35 = vpop.f32.mrf.mxu1 }
 0x931   :  { %v601_v37 = vadd.f32 %v2016_v46, %v600_v35  ;;  %v672_v38 = vpop.f32.mrf.mxu0 }
 0x932   :  { %v678_v39 = vadd.f32 %v672_v38, %v119_v36  ;;  %v1583_v40 = vpop.f32.mrf.mxu1 }
 0x933   :  { %v1438_v41 = vmul.f32 -1.442695, %v601_v37  ;;  %v1591_v42 = vpop.f32.mrf.mxu0 }
 0x934   :  { %v1440_v43 = vmul.f32 -1.442695, %v678_v39  ;;  %v603_v44 = vpop.f32.mrf.mxu1 }
 0x935   :  { %1740 = vpow2.f32 %v1438_v41  ;;  %v675_v45 = vpop.f32.mrf.mxu0 }
 0x936   :  { %1742 = vpow2.f32 %v1440_v43  ;;  %v1584_v47 = vpop.f32.mrf.mxu1 }
 0x937   :  { %v1592_v48 = vpop.f32.mrf.mxu0  ;;  %1744 = vtanh.f32 %v601_v37 }
 0x938   :  { %1746 = vtanh.f32 %v678_v39 }
 0x942   :  { %v1741_v49 = vpop.eup %1740 }
 0x943   :  { %v1743_v50 = vpop.eup %1742  ;;  %v609_v51 = vadd.f32 1.0, %v1741_v49 }
 0x944   :  { %v682_v52 = vadd.f32 1.0, %v1743_v50  ;;  %v1745_v53 = vpop.eup %1744 }
 0x945   :  { %1748 = vrcp.f32 %v609_v51  ;;  %v1747_v54 = vpop.eup %1746 }
 0x946   :  { %1750 = vrcp.f32 %v682_v52 }
 0x952   :  { %v1749_v55 = vpop.eup %1748 }
 0x953   :  { %v1751_v56 = vpop.eup %1750  ;;  %v613_v57 = vsel %vm1959_vm3, %v1745_v53, %v1749_v55 }
 0x954   :  { %616 = vrot.lane.b32.xlu1 %v613_v57, %s1858_s10  ;;  %v686_v58 = vsel %vm1959_vm3, %v1747_v54, %v1751_v56  ;;  %v614_v63 = vmul.f32 %v613_v57, %v2074_v13 }
 0x955   :  { %689 = vrot.lane.b32.xlu0 %v686_v58, %s1858_s10  ;;  %v687_v2 = vmul.f32 %v686_v58, %v2076_v14  ;;  %v50_v14 = vld [vmem:[%s2317_s0 + $0x8] sm:$0x3] }
 0x9c6   :  { %v617_v59 = vpop.permute.xlu1 %616 }
 0x9c7   :  { %v619_v60 = vmul.f32 %v617_v59, %v613_v57  ;;  %v690_v61 = vpop.permute.xlu0 %689 }
 0x9c8   :  { %v692_v62 = vmul.f32 %v690_v61, %v686_v58 }
 0x9c9   :  { %621 = vrot.lane.b32.xlu1 %v619_v60, %s1863_s21 }
 0x9ca   :  { %694 = vrot.lane.b32.xlu0 %v692_v62, %s1863_s21 }
 0xa3b   :  { %v622_v0 = vpop.permute.xlu1 %621 }
 0xa3c   :  { %v2120_v5 = vadd.f32 %v622_v0, %v614_v63  ;;  %v695_v7 = vpop.permute.xlu0 %694 }
 0xa3d   :  { %v2122_v8 = vadd.f32 %v695_v7, %v687_v2 }
 0xa3e   :  { %1752 = vtanh.f32 %v2120_v5 }
 0xa3f   :  { %1754 = vtanh.f32 %v2122_v8 }
 0xa4b   :  { %v1753_v10 = vpop.eup %1752 }
 0xa4c   :  { %v1755_v11 = vpop.eup %1754  ;;  %627 = vrot.lane.b32.xlu1 %v1753_v10, %s1858_s10 }
 0xa4d   :  { %700 = vrot.lane.b32.xlu0 %v1755_v11, %s1858_s10 }
 0xabe   :  { %v628_v12 = vpop.permute.xlu1 %627 }
 0xabf   :  { %v630_v13 = vmul.f32 %v628_v12, %v613_v57  ;;  %v701_v15 = vpop.permute.xlu0 %700 }
 0xac0   :  { %v703_v16 = vmul.f32 %v701_v15, %v686_v58 }
 0xac1   :  { %709 = vrot.lane.b32.xlu0 %v630_v13, %s1858_s10 }
 0xac2   :  { %705 = vrot.lane.b32.xlu1 %v703_v16, %s1863_s21  ;;  %v782_v18 = vpack.c.bf16 %v703_v16, %v703_v16 }
 0xac5   :  { %77 = vperm.xlu0 %1693, %v50_v14  }
 0xac6   :  { %784 = vrot.lane.b32.xlu1 %v782_v18, %s1863_s21 }
 0xb33   :  { %v710_v19 = vpop.permute.xlu0 %709 }
 0xb34   :  { %v706_v20 = vpop.permute.xlu1 %705 }
 0xb35   :  { %v712_v17 = vsel %vm154_vm4, %v706_v20, %v710_v19 }
 0xb36   :  { %v713_v22 = vpack.c.bf16 %v712_v17, %v712_v17 }
 0xb38   :  { %1602 = vmatmul.mubr.msk.bf16.vlgmr.msra.gmra.mxu0 %vm260_vm5, %v713_v22  ;;  %v785_v23 = vpop.permute.xlu1 %784 }
 0xb39   :  { %1610 = vmatmul.mubr.msk.bf16.vlgmr.msra.gmra.mxu1 %vm154_vm4, %v785_v23  ;;  %1626 = vmatpush3.bf16.msra.mxu0 %v1927_v3 }
 0xb3a   :  { %1614 = vmatpush3.bf16.msra.mxu1 %v1970_v30  ;;  %1627 = vmatprep.subr.bf16.mxu0 %v1860_v1 }
 0xb3b   :  { %1615 = vmatprep.subr.bf16.mxu1 %v1860_v1  ;;  %1621 = vmatprep.mubr.msk.bf16.mxu1 %vm1861_vm0, %v1860_v1 }
 0xb3c   :  { %1629 = vmatprep.mubr.msk.bf16.mxu0 %vm1861_vm0, %v1860_v1 }
 0xb3d   :  { %1628 = vmatpush3.bf16.msra.mxu0 %v1933_v4 }
 0xb3e   :  { %1616 = vmatpush3.bf16.msra.mxu1 %v1973_v31  ;;  %1633 = vmatprep.subr.bf16.mxu0 %v1860_v1 }
 0xb3f   :  { %1617 = vmatprep.subr.bf16.mxu1 %v1860_v1 }
 0xb40   :  { %v78_v24 = vpop.permute.xlu0 %77 }
 0xb41   :  { %v105_v25 = vmul.f32 %v1950_v6, %v78_v24 }
 0xb42   :  { %1618 = vmatpush3.bf16.msra.mxu1 %v1977_v33 }
 0xb43   :  { %1619 = vmatprep.subr.bf16.mxu1 %v1860_v1  ;;  %v120_v27 = vadd.f32 %v1956_v9, %v105_v25 }
 0xb46   :  { %1620 = vmatpush3.bf16.msra.mxu1 %v1983_v34 }
 0xb47   :  { %1645 = vmatprep.subr.bf16.mxu1 %v1860_v1 }
 0xbf8   :  { %v751_v26 = vpop.f32.mrf.mxu0 }
 0xbf9   :  { %v752_v28 = vadd.f32 %v2016_v46, %v751_v26  ;;  %v823_v29 = vpop.f32.mrf.mxu1 }
 0xbfa   :  { %v829_v32 = vadd.f32 %v823_v29, %v120_v27  ;;  %v1603_v35 = vpop.f32.mrf.mxu0 }
 0xbfb   :  { %v1442_v36 = vmul.f32 -1.442695, %v752_v28  ;;  %v1611_v37 = vpop.f32.mrf.mxu1 }
 0xbfc   :  { %v1444_v38 = vmul.f32 -1.442695, %v829_v32  ;;  %v754_v39 = vpop.f32.mrf.mxu0 }
 0xbfd   :  { %1756 = vpow2.f32 %v1442_v36  ;;  %v826_v40 = vpop.f32.mrf.mxu1 }
 0xbfe   :  { %1758 = vpow2.f32 %v1444_v38  ;;  %v1604_v41 = vpop.f32.mrf.mxu0 }
 0xbff   :  { %v1612_v42 = vpop.f32.mrf.mxu1  ;;  %1760 = vtanh.f32 %v752_v28 }
 0xc00   :  { %1762 = vtanh.f32 %v829_v32 }
 0xc0a   :  { %v1757_v43 = vpop.eup %1756 }
 0xc0b   :  { %v1759_v44 = vpop.eup %1758  ;;  %v760_v45 = vadd.f32 1.0, %v1757_v43 }
 0xc0c   :  { %v833_v47 = vadd.f32 1.0, %v1759_v44  ;;  %v1761_v48 = vpop.eup %1760 }
 0xc0d   :  { %1764 = vrcp.f32 %v760_v45  ;;  %v1763_v49 = vpop.eup %1762 }
 0xc0e   :  { %1766 = vrcp.f32 %v833_v47 }
 0xc1a   :  { %v1765_v50 = vpop.eup %1764 }
 0xc1b   :  { %v1767_v51 = vpop.eup %1766  ;;  %v764_v52 = vsel %vm1959_vm3, %v1761_v48, %v1765_v50 }
 0xc1c   :  { %767 = vrot.lane.b32.xlu1 %v764_v52, %s1858_s10  ;;  %v837_v53 = vsel %vm1959_vm3, %v1763_v49, %v1767_v51  ;;  %v765_v58 = vmul.f32 %v764_v52, %v2120_v5 }
 0xc1d   :  { %840 = vrot.lane.b32.xlu0 %v837_v53, %s1858_s10  ;;  %v838_v60 = vmul.f32 %v837_v53, %v2122_v8  ;;  %v51_v8 = vld [vmem:[%s2317_s0 + $0xa] sm:$0x3] }
 0xc8e   :  { %v768_v54 = vpop.permute.xlu1 %767 }
 0xc8f   :  { %v770_v55 = vmul.f32 %v768_v54, %v764_v52  ;;  %v841_v56 = vpop.permute.xlu0 %840 }
 0xc90   :  { %v843_v57 = vmul.f32 %v841_v56, %v837_v53 }
 0xc91   :  { %772 = vrot.lane.b32.xlu1 %v770_v55, %s1863_s21 }
 0xc92   :  { %845 = vrot.lane.b32.xlu0 %v843_v57, %s1863_s21 }
 0xd03   :  { %v773_v59 = vpop.permute.xlu1 %772 }
 0xd04   :  { %v2166_v61 = vadd.f32 %v773_v59, %v765_v58  ;;  %v846_v62 = vpop.permute.xlu0 %845 }
 0xd05   :  { %v2168_v63 = vadd.f32 %v846_v62, %v838_v60 }
 0xd06   :  { %1768 = vtanh.f32 %v2166_v61 }
 0xd07   :  { %1770 = vtanh.f32 %v2168_v63 }
 0xd13   :  { %v1769_v0 = vpop.eup %1768 }
 0xd14   :  { %v1771_v2 = vpop.eup %1770  ;;  %778 = vrot.lane.b32.xlu1 %v1769_v0, %s1858_s10 }
 0xd15   :  { %851 = vrot.lane.b32.xlu0 %v1771_v2, %s1858_s10 }
 0xd86   :  { %v779_v7 = vpop.permute.xlu1 %778 }
 0xd87   :  { %v781_v5 = vmul.f32 %v779_v7, %v764_v52  ;;  %v852_v10 = vpop.permute.xlu0 %851 }
 0xd88   :  { %v854_v11 = vmul.f32 %v852_v10, %v837_v53 }
 0xd89   :  { %860 = vrot.lane.b32.xlu0 %v781_v5, %s1858_s10 }
 0xd8a   :  { %856 = vrot.lane.b32.xlu1 %v854_v11, %s1863_s21  ;;  %v933_v12 = vpack.c.bf16 %v854_v11, %v854_v11 }
 0xd8d   :  { %82 = vperm.xlu0 %1693, %v51_v8  }
 0xd8e   :  { %935 = vrot.lane.b32.xlu1 %v933_v12, %s1863_s21 }
 0xdfb   :  { %v861_v13 = vpop.permute.xlu0 %860 }
 0xdfc   :  { %v857_v15 = vpop.permute.xlu1 %856 }
 0xdfd   :  { %v863_v16 = vsel %vm154_vm4, %v857_v15, %v861_v13 }
 0xdfe   :  { %v864_v14 = vpack.c.bf16 %v863_v16, %v863_v16 }
 0xe00   :  { %1622 = vmatmul.mubr.msk.bf16.vlgmr.msra.gmra.mxu1 %vm260_vm5, %v864_v14  ;;  %v936_v18 = vpop.permute.xlu1 %935 }
 0xe01   :  { %1630 = vmatmul.mubr.msk.bf16.vlgmr.msra.gmra.mxu0 %vm154_vm4, %v936_v18  ;;  %1646 = vmatpush3.bf16.msra.mxu1 %v1927_v3 }
 0xe02   :  { %1634 = vmatpush3.bf16.msra.mxu0 %v1970_v30  ;;  %1647 = vmatprep.subr.bf16.mxu1 %v1860_v1 }
 0xe03   :  { %1635 = vmatprep.subr.bf16.mxu0 %v1860_v1  ;;  %1641 = vmatprep.mubr.msk.bf16.mxu0 %vm1861_vm0, %v1860_v1 }
 0xe04   :  { %1649 = vmatprep.mubr.msk.bf16.mxu1 %vm1861_vm0, %v1860_v1 }
 0xe05   :  { %1648 = vmatpush3.bf16.msra.mxu1 %v1933_v4 }
 0xe06   :  { %1636 = vmatpush3.bf16.msra.mxu0 %v1973_v31  ;;  %1653 = vmatprep.subr.bf16.mxu1 %v1860_v1 }
 0xe07   :  { %1637 = vmatprep.subr.bf16.mxu0 %v1860_v1 }
 0xe08   :  { %v83_v19 = vpop.permute.xlu0 %82 }
 0xe09   :  { %v106_v20 = vmul.f32 %v1950_v6, %v83_v19 }
 0xe0a   :  { %1638 = vmatpush3.bf16.msra.mxu0 %v1977_v33 }
 0xe0b   :  { %1639 = vmatprep.subr.bf16.mxu0 %v1860_v1  ;;  %v121_v22 = vadd.f32 %v1956_v9, %v106_v20 }
 0xe0e   :  { %1640 = vmatpush3.bf16.msra.mxu0 %v1983_v34 }
 0xe0f   :  { %1665 = vmatprep.subr.bf16.mxu0 %v1860_v1 }
 0xec0   :  { %v902_v17 = vpop.f32.mrf.mxu1 }
 0xec1   :  { %v903_v23 = vadd.f32 %v2016_v46, %v902_v17  ;;  %v974_v24 = vpop.f32.mrf.mxu0 }
 0xec2   :  { %v980_v25 = vadd.f32 %v974_v24, %v121_v22  ;;  %v1623_v26 = vpop.f32.mrf.mxu1 }
 0xec3   :  { %v1446_v27 = vmul.f32 -1.442695, %v903_v23  ;;  %v1631_v28 = vpop.f32.mrf.mxu0 }
 0xec4   :  { %v1448_v29 = vmul.f32 -1.442695, %v980_v25  ;;  %v905_v32 = vpop.f32.mrf.mxu1 }
 0xec5   :  { %1772 = vpow2.f32 %v1446_v27  ;;  %v977_v35 = vpop.f32.mrf.mxu0 }
 0xec6   :  { %1774 = vpow2.f32 %v1448_v29  ;;  %v1624_v36 = vpop.f32.mrf.mxu1 }
 0xec7   :  { %v1632_v37 = vpop.f32.mrf.mxu0  ;;  %1776 = vtanh.f32 %v903_v23 }
 0xec8   :  { %1778 = vtanh.f32 %v980_v25 }
 0xed2   :  { %v1773_v38 = vpop.eup %1772 }
 0xed3   :  { %v1775_v39 = vpop.eup %1774  ;;  %v911_v40 = vadd.f32 1.0, %v1773_v38 }
 0xed4   :  { %v984_v41 = vadd.f32 1.0, %v1775_v39  ;;  %v1777_v42 = vpop.eup %1776 }
 0xed5   :  { %1780 = vrcp.f32 %v911_v40  ;;  %v1779_v43 = vpop.eup %1778 }
 0xed6   :  { %1782 = vrcp.f32 %v984_v41 }
 0xee2   :  { %v1781_v44 = vpop.eup %1780 }
 0xee3   :  { %v1783_v45 = vpop.eup %1782  ;;  %v915_v47 = vsel %vm1959_vm3, %v1777_v42, %v1781_v44 }
 0xee4   :  { %918 = vrot.lane.b32.xlu1 %v915_v47, %s1858_s10  ;;  %v988_v48 = vsel %vm1959_vm3, %v1779_v43, %v1783_v45  ;;  %v916_v53 = vmul.f32 %v915_v47, %v2166_v61 }
 0xee5   :  { %991 = vrot.lane.b32.xlu0 %v988_v48, %s1858_s10  ;;  %v989_v55 = vmul.f32 %v988_v48, %v2168_v63  ;;  %v52_v63 = vld [vmem:[%s2317_s0 + $0xc] sm:$0x3] }
 0xf56   :  { %v919_v49 = vpop.permute.xlu1 %918 }
 0xf57   :  { %v921_v50 = vmul.f32 %v919_v49, %v915_v47  ;;  %v992_v51 = vpop.permute.xlu0 %991 }
 0xf58   :  { %v994_v52 = vmul.f32 %v992_v51, %v988_v48 }
 0xf59   :  { %923 = vrot.lane.b32.xlu1 %v921_v50, %s1863_s21 }
 0xf5a   :  { %996 = vrot.lane.b32.xlu0 %v994_v52, %s1863_s21  ;;  %v53_v52 = vld [vmem:[%s2317_s0 + $0xe] sm:$0x3] }
 0xfcb   :  { %v924_v54 = vpop.permute.xlu1 %923 }
 0xfcc   :  { %v2212_v56 = vadd.f32 %v924_v54, %v916_v53  ;;  %v997_v57 = vpop.permute.xlu0 %996 }
 0xfcd   :  { %v2214_v58 = vadd.f32 %v997_v57, %v989_v55 }
 0xfce   :  { %1784 = vtanh.f32 %v2212_v56 }
 0xfcf   :  { %1786 = vtanh.f32 %v2214_v58 }
 0xfdb   :  { %v1785_v59 = vpop.eup %1784 }
 0xfdc   :  { %v1787_v60 = vpop.eup %1786  ;;  %929 = vrot.lane.b32.xlu1 %v1785_v59, %s1858_s10  ;;  %v1828_v59 = vld [vmem:[#allocation3 + $0x18] sm:$0xff]  }
 0xfdd   :  { %1002 = vrot.lane.b32.xlu0 %v1787_v60, %s1858_s10  ;;  %v1829_v60 = vld [vmem:[#allocation3 + $0x10] sm:$0xff]  }
0x104e   :  { %v930_v62 = vpop.permute.xlu1 %929 }
0x104f   :  { %v932_v61 = vmul.f32 %v930_v62, %v915_v47  ;;  %v1003_v0 = vpop.permute.xlu0 %1002  ;;  %v1830_v62 = vld [vmem:[#allocation3 + $0x8] sm:$0xff]  }
0x1050   :  { %v1005_v2 = vmul.f32 %v1003_v0, %v988_v48 }
0x1051   :  { %1011 = vrot.lane.b32.xlu0 %v932_v61, %s1858_s10  ;;  %v1831_v61 = vld [vmem:[#allocation3] sm:$0xff]  }
0x1052   :  { %1007 = vrot.lane.b32.xlu1 %v1005_v2, %s1863_s21  ;;  %v1084_v7 = vpack.c.bf16 %v1005_v2, %v1005_v2  ;;  %v1832_v2 = vld [vmem:[%s2318_s1] ss:$0 sm:$0xff] }
0x1055   :  { %87 = vperm.xlu0 %1693, %v52_v63  }
0x1056   :  { %1086 = vrot.lane.b32.xlu1 %v1084_v7, %s1863_s21 }
0x10c3   :  { %v1012_v5 = vpop.permute.xlu0 %1011 }
0x10c4   :  { %v1008_v10 = vpop.permute.xlu1 %1007 }
0x10c5   :  { %v1014_v11 = vsel %vm154_vm4, %v1008_v10, %v1012_v5  ;;  %v1833_v5 = vld [vmem:[%s2320_s3] ss:$0 sm:$0xff] }
0x10c6   :  { %v1015_v8 = vpack.c.bf16 %v1014_v11, %v1014_v11 }
0x10c8   :  { %1642 = vmatmul.mubr.msk.bf16.vlgmr.msra.gmra.mxu0 %vm260_vm5, %v1015_v8  ;;  %v1087_v12 = vpop.permute.xlu1 %1086 }
0x10c9   :  { %1650 = vmatmul.mubr.msk.bf16.vlgmr.msra.gmra.mxu1 %vm154_vm4, %v1087_v12  ;;  %1666 = vmatpush3.bf16.msra.mxu0 %v1927_v3 }
0x10ca   :  { %1654 = vmatpush3.bf16.msra.mxu1 %v1970_v30  ;;  %1667 = vmatprep.subr.bf16.mxu0 %v1860_v1 }
0x10cb   :  { %1655 = vmatprep.subr.bf16.mxu1 %v1860_v1  ;;  %1661 = vmatprep.mubr.msk.bf16.mxu1 %vm1861_vm0, %v1860_v1 }
0x10cc   :  { %1669 = vmatprep.mubr.msk.bf16.mxu0 %vm1861_vm0, %v1860_v1 }
0x10cd   :  { %1668 = vmatpush3.bf16.msra.mxu0 %v1933_v4 }
0x10ce   :  { %1656 = vmatpush3.bf16.msra.mxu1 %v1973_v31  ;;  %1673 = vmatprep.subr.bf16.mxu0 %v1860_v1 }
0x10cf   :  { %1657 = vmatprep.subr.bf16.mxu1 %v1860_v1 }
0x10d0   :  { %v88_v3 = vpop.permute.xlu0 %87 }
0x10d1   :  { %v107_v30 = vmul.f32 %v1950_v6, %v88_v3 }
0x10d2   :  { %1658 = vmatpush3.bf16.msra.mxu1 %v1977_v33 }
0x10d3   :  { %1659 = vmatprep.subr.bf16.mxu1 %v1860_v1  ;;  %v122_v15 = vadd.f32 %v1956_v9, %v107_v30 }
0x10d6   :  { %1660 = vmatpush3.bf16.msra.mxu1 %v1983_v34 }
0x1188   :  { %v1053_v13 = vpop.f32.mrf.mxu0 }
0x1189   :  { %v1054_v4 = vadd.f32 %v2016_v46, %v1053_v13  ;;  %v1125_v16 = vpop.f32.mrf.mxu1 }
0x118a   :  { %v1131_v31 = vadd.f32 %v1125_v16, %v122_v15  ;;  %v1643_v14 = vpop.f32.mrf.mxu0 }
0x118b   :  { %v1450_v18 = vmul.f32 -1.442695, %v1054_v4  ;;  %v1651_v19 = vpop.f32.mrf.mxu1 }
0x118c   :  { %v1452_v20 = vmul.f32 -1.442695, %v1131_v31  ;;  %v1056_v17 = vpop.f32.mrf.mxu0 }
0x118d   :  { %1788 = vpow2.f32 %v1450_v18  ;;  %v1128_v33 = vpop.f32.mrf.mxu1 }
0x118e   :  { %1790 = vpow2.f32 %v1452_v20  ;;  %v1644_v22 = vpop.f32.mrf.mxu0 }
0x118f   :  { %v1652_v34 = vpop.f32.mrf.mxu1  ;;  %1792 = vtanh.f32 %v1054_v4 }
0x1190   :  { %1794 = vtanh.f32 %v1131_v31 }
0x119a   :  { %v1789_v23 = vpop.eup %1788 }
0x119b   :  { %v1791_v24 = vpop.eup %1790  ;;  %v1062_v6 = vadd.f32 1.0, %v1789_v23 }
0x119c   :  { %v1135_v25 = vadd.f32 1.0, %v1791_v24  ;;  %v1793_v9 = vpop.eup %1792 }
0x119d   :  { %1796 = vrcp.f32 %v1062_v6  ;;  %v1795_v26 = vpop.eup %1794 }
0x119e   :  { %1798 = vrcp.f32 %v1135_v25 }
0x11aa   :  { %v1797_v27 = vpop.eup %1796 }
0x11ab   :  { %v1799_v28 = vpop.eup %1798  ;;  %v1066_v29 = vsel %vm1959_vm3, %v1793_v9, %v1797_v27 }
0x11ac   :  { %1069 = vrot.lane.b32.xlu1 %v1066_v29, %s1858_s10  ;;  %v1139_v32 = vsel %vm1959_vm3, %v1795_v26, %v1799_v28  ;;  %v1067_v39 = vmul.f32 %v1066_v29, %v2212_v56 }
0x11ad   :  { %1142 = vrot.lane.b32.xlu0 %v1139_v32, %s1858_s10  ;;  %v1140_v41 = vmul.f32 %v1139_v32, %v2214_v58 }
0x121e   :  { %v1070_v35 = vpop.permute.xlu1 %1069 }
0x121f   :  { %v1072_v36 = vmul.f32 %v1070_v35, %v1066_v29  ;;  %v1143_v37 = vpop.permute.xlu0 %1142 }
0x1220   :  { %v1145_v38 = vmul.f32 %v1143_v37, %v1139_v32 }
0x1221   :  { %1074 = vrot.lane.b32.xlu1 %v1072_v36, %s1863_s21 }
0x1222   :  { %1147 = vrot.lane.b32.xlu0 %v1145_v38, %s1863_s21 }
0x1293   :  { %v1075_v40 = vpop.permute.xlu1 %1074 }
0x1294   :  { %v2257_v42 = vadd.f32 %v1075_v40, %v1067_v39  ;;  %v1148_v43 = vpop.permute.xlu0 %1147 }
0x1295   :  { %v2259_v44 = vadd.f32 %v1148_v43, %v1140_v41 }
0x1296   :  { %1800 = vtanh.f32 %v2257_v42 }
0x1297   :  { %1802 = vtanh.f32 %v2259_v44 }
0x12a3   :  { %v1801_v45 = vpop.eup %1800 }
0x12a4   :  { %v1803_v47 = vpop.eup %1802  ;;  %1080 = vrot.lane.b32.xlu1 %v1801_v45, %s1858_s10 }
0x12a5   :  { %1153 = vrot.lane.b32.xlu0 %v1803_v47, %s1858_s10 }
0x1316   :  { %v1081_v48 = vpop.permute.xlu1 %1080 }
0x1317   :  { %v1083_v49 = vmul.f32 %v1081_v48, %v1066_v29  ;;  %v1154_v50 = vpop.permute.xlu0 %1153  ;;  %v1834_v48 = vld [vmem:[%s2322_s5] ss:$0 sm:$0xff] }
0x1318   :  { %v1156_v51 = vmul.f32 %v1154_v50, %v1139_v32 }
0x1319   :  { %1162 = vrot.lane.b32.xlu0 %v1083_v49, %s1858_s10 }
0x131a   :  { %1158 = vrot.lane.b32.xlu1 %v1156_v51, %s1863_s21  ;;  %v1235_v53 = vpack.c.bf16 %v1156_v51, %v1156_v51 }
0x131d   :  { %92 = vperm.xlu0 %1693, %v53_v52  }
0x131e   :  { %1237 = vrot.lane.b32.xlu1 %v1235_v53, %s1863_s21 }
0x138b   :  { %v1163_v54 = vpop.permute.xlu0 %1162 }
0x138c   :  { %v1159_v55 = vpop.permute.xlu1 %1158 }
0x138d   :  { %v1165_v56 = vsel %vm154_vm4, %v1159_v55, %v1163_v54 }
0x138e   :  { %v1166_v57 = vpack.c.bf16 %v1165_v56, %v1165_v56 }
0x1390   :  { %1662 = vmatmul.mubr.msk.bf16.vlgmr.msra.gmra.mxu1 %vm260_vm5, %v1166_v57  ;;  %v1238_v58 = vpop.permute.xlu1 %1237 }
0x1391   :  { %1670 = vmatmul.mubr.msk.bf16.vlgmr.msra.gmra.mxu0 %vm154_vm4, %v1238_v58 }
0x1392   :  { %1674 = vmatpush3.bf16.msra.mxu0 %v1828_v59  ;;  %1681 = vmatprep.mubr.msk.bf16.mxu0 %vm1861_vm0, %v1860_v1 }
0x1393   :  { %1675 = vmatprep.subr.bf16.mxu0 %v1860_v1 }
0x1396   :  { %1676 = vmatpush3.bf16.msra.mxu0 %v1829_v60 }
0x1397   :  { %1677 = vmatprep.subr.bf16.mxu0 %v1860_v1 }
0x1398   :  { %v93_v0 = vpop.permute.xlu0 %92 }
0x1399   :  { %v108_v63 = vmul.f32 %v1832_v2, %v93_v0 }
0x139a   :  { %1678 = vmatpush3.bf16.msra.mxu0 %v1830_v62  ;;  %v1459_v62 = vld [vmem:[%s2323_s6] ss:$0 sm:$0xff] }
0x139b   :  { %1679 = vmatprep.subr.bf16.mxu0 %v1860_v1  ;;  %v123_v10 = vadd.f32 %v1833_v5, %v108_v63 }
0x139e   :  { %1680 = vmatpush3.bf16.msra.mxu0 %v1831_v61 }
0x1450   :  { %v1204_v7 = vpop.f32.mrf.mxu1 }
0x1451   :  { %v1205_v11 = vadd.f32 %v2016_v46, %v1204_v7  ;;  %v1276_v8 = vpop.f32.mrf.mxu0 }
0x1452   :  { %v1282_v12 = vadd.f32 %v1276_v8, %v123_v10  ;;  %v1663_v3 = vpop.f32.mrf.mxu1 }
0x1453   :  { %v1454_v1 = vmul.f32 -1.442695, %v1205_v11  ;;  %v1671_v30 = vpop.f32.mrf.mxu0 }
0x1454   :  { %v1456_v13 = vmul.f32 -1.442695, %v1282_v12  ;;  %v1207_v15 = vpop.f32.mrf.mxu1 }
0x1455   :  { %1804 = vpow2.f32 %v1454_v1  ;;  %v1279_v4 = vpop.f32.mrf.mxu0 }
0x1456   :  { %1806 = vpow2.f32 %v1456_v13  ;;  %v1664_v16 = vpop.f32.mrf.mxu1 }
0x1457   :  { %v1672_v31 = vpop.f32.mrf.mxu0  ;;  %1808 = vtanh.f32 %v1205_v11 }
0x1458   :  { %1810 = vtanh.f32 %v1282_v12  ;;  %v1460_v12 = vld [vmem:[#allocation2] ss:$0 sm:$0xff] }
0x1462   :  { %v1805_v14 = vpop.eup %1804 }
0x1463   :  { %v1807_v18 = vpop.eup %1806  ;;  %v1213_v19 = vadd.f32 1.0, %v1805_v14 }
0x1464   :  { %v1286_v20 = vadd.f32 1.0, %v1807_v18  ;;  %v1809_v46 = vpop.eup %1808 }
0x1465   :  { %1812 = vrcp.f32 %v1213_v19  ;;  %v1811_v17 = vpop.eup %1810 }
0x1466   :  { %1814 = vrcp.f32 %v1286_v20 }
0x1472   :  { %v1813_v33 = vpop.eup %1812 }
0x1473   :  { %v1815_v22 = vpop.eup %1814  ;;  %v1217_v34 = vsel %vm1959_vm3, %v1809_v46, %v1813_v33 }
0x1474   :  { %1220 = vrot.lane.b32.xlu1 %v1217_v34, %s1858_s10  ;;  %v1290_v23 = vsel %vm1959_vm3, %v1811_v17, %v1815_v22  ;;  %v1218_v26 = vmul.f32 %v1217_v34, %v2257_v42 }
0x1475   :  { %1293 = vrot.lane.b32.xlu0 %v1290_v23, %s1858_s10  ;;  %v1291_v28 = vmul.f32 %v1290_v23, %v2259_v44 }
0x14e6   :  { %v1221_v24 = vpop.permute.xlu1 %1220 }
0x14e7   :  { %v1223_v6 = vmul.f32 %v1221_v24, %v1217_v34  ;;  %v1294_v25 = vpop.permute.xlu0 %1293 }
0x14e8   :  { %v1296_v9 = vmul.f32 %v1294_v25, %v1290_v23 }
0x14e9   :  { %1225 = vrot.lane.b32.xlu1 %v1223_v6, %s1863_s21 }
0x14ea   :  { %1298 = vrot.lane.b32.xlu0 %v1296_v9, %s1863_s21 }
0x155b   :  { %v1226_v27 = vpop.permute.xlu1 %1225 }
0x155c   :  { %v1228_v29 = vadd.f32 %v1226_v27, %v1218_v26  ;;  %v1299_v32 = vpop.permute.xlu0 %1298 }
0x155d   :  { %v1301_v35 = vadd.f32 %v1299_v32, %v1291_v28 }
0x155e   :  { %1816 = vtanh.f32 %v1228_v29 }
0x155f   :  { %1818 = vtanh.f32 %v1301_v35 }
0x156b   :  { %v1817_v36 = vpop.eup %1816 }
0x156c   :  { %v1819_v37 = vpop.eup %1818  ;;  %1231 = vrot.lane.b32.xlu1 %v1817_v36, %s1858_s10 }
0x156d   :  { %1304 = vrot.lane.b32.xlu0 %v1819_v37, %s1858_s10 }
0x15de   :  { %v1232_v38 = vpop.permute.xlu1 %1231 }
0x15df   :  { %v1234_v39 = vmul.f32 %v1232_v38, %v1217_v34  ;;  %v1305_v40 = vpop.permute.xlu0 %1304 }
0x15e0   :  { %v1307_v41 = vmul.f32 %v1305_v40, %v1290_v23 }
0x15e1   :  { %1313 = vrot.lane.b32.xlu0 %v1234_v39, %s1858_s10 }
0x15e2   :  { %1309 = vrot.lane.b32.xlu1 %v1307_v41, %s1863_s21 }
0x1653   :  { %v1314_v42 = vpop.permute.xlu0 %1313 }
0x1654   :  { %v1310_v43 = vpop.permute.xlu1 %1309 }
0x1655   :  { %v1316_v44 = vsel %vm154_vm4, %v1310_v43, %v1314_v42 }
0x1656   :  { %v1317_v45 = vpack.c.bf16 %v1316_v44, %v1316_v44 }
0x1658   :  { %1682 = vmatmul.mubr.msk.bf16.vlgmr.msra.gmra.mxu0 %vm260_vm5, %v1317_v45 }
0x1718   :  { %v1355_v47 = vpop.f32.mrf.mxu0 }
0x1719   :  { %v1356_v49 = vadd.f32 %v1834_v48, %v1355_v47 }
0x171a   :  { %v1683_v50 = vpop.f32.mrf.mxu0 }
0x171b   :  { %v1458_v51 = vmul.f32 -1.442695, %v1356_v49 }
0x171c   :  { %v1358_v52 = vpop.f32.mrf.mxu0 }
0x171d   :  { %1820 = vpow2.f32 %v1458_v51 }
0x171e   :  { %v1684_v53 = vpop.f32.mrf.mxu0  ;;  %1822 = vtanh.f32 %v1356_v49 }
0x172a   :  { %v1821_v54 = vpop.eup %1820 }
0x172b   :  { %v1364_v55 = vadd.f32 1.0, %v1821_v54  ;;  %v1823_v56 = vpop.eup %1822 }
0x172d   :  { %1824 = vrcp.f32 %v1364_v55 }
0x173a   :  { %v1825_v57 = vpop.eup %1824 }
0x173b   :  { %v1368_v58 = vsel %vm1959_vm3, %v1823_v56, %v1825_v57 }
0x173c   :  { %1371 = vrot.lane.b32.xlu1 %v1368_v58, %s1858_s10  ;;  %v1369_v61 = vmul.f32 %v1368_v58, %v1228_v29 }
0x17ae   :  { %v1372_v59 = vpop.permute.xlu1 %1371 }
0x17af   :  { %v1374_v60 = vmul.f32 %v1372_v59, %v1368_v58 }
0x17b1   :  { %1376 = vrot.lane.b32.xlu0 %v1374_v60, %s1863_s21 }
0x17b5   :  { %1392 = vrot.lane.b32.xlu0 %v1459_v62, %s1864_s18 }
0x1823   :  { %v1377_v0 = vpop.permute.xlu0 %1376 }
0x1824   :  { %v1379_v2 = vadd.f32 %v1377_v0, %v1369_v61 }
0x1826   :  { %1826 = vtanh.f32 %v1379_v2 }
0x1827   :  { %v1393_v7 = vpop.permute.xlu0 %1392 }
0x1833   :  { %v1827_v63 = vpop.eup %1826 }
0x1834   :  { %1382 = vrot.lane.b32.xlu1 %v1827_v63, %s1858_s10 }
0x18a6   :  { %v1383_v21 = vpop.permute.xlu1 %1382 }
0x18a7   :  { %v1385_v5 = vmul.f32 %v1383_v21, %v1368_v58 }
0x18a9   :  { %v1395_v10 = vmul.f32 %v1393_v7, %v1385_v5 }
0x18ab   :  { %1397 = vrot.lane.b32.xlu1 %v1395_v10, %s1863_s21 }
0x191d   :  { %v1398_v11 = vpop.permute.xlu1 %1397 }
0x191e   :  { %v1401_v8 = vsel %vm1400_vm6, %v1398_v11, 0.0 }
0x191f   :  { %1402 = vadd.xlane.f32.xlu0 %v1401_v8 }
0x19a8   :  { %v1403_v3 = vpop.xlane.xlu0 %1402 }
0x19a9   :  { %v1411_v1 = vadd.f32 %v1460_v12, %v1403_v3 }
0x19ab   :  { %1413 = vst.msk [vmem:[%s2325_s8] sm:$0x3] %vm1412_vm7, %v1411_v1 }
0x19ac   :  { %1418 = vsyncpa [#allocation4], 1 }

</bundles_post_ra>
